<compile_context>
chip_gen: v6e
topology: v6e:2x2x1
jax: 0.10.0
libtpu: 0.0.40
codegen_flags: <defaults>
</compile_context>

<pallas_src>
import math

import jax
import jax.numpy as jnp
from jax.experimental import pallas as pl
from jax.experimental.pallas import tpu as pltpu

# ----- small, self-consistent model dimensions (real model: H=768, S=512) -----
B, S, H = 2, 8, 32          # batch, seq_len, hidden
NH, DH = 4, 8               # heads, head dim (NH * DH == H)
F = 64                      # FFN inner dim
L = 2                       # encoder layers
C = 10                      # classes  (nn.Linear(768, 10) -> here Linear(H, 10))
C_PAD = 128                 # lane-dense padded class dim for the output store
VOCAB = 64


def _layernorm(x, gamma, beta, eps=1e-12):
    mu = jnp.mean(x, axis=-1, keepdims=True)
    var = jnp.mean((x - mu) ** 2, axis=-1, keepdims=True)
    return (x - mu) * jax.lax.rsqrt(var + eps) * gamma + beta


def _gelu(x):
    # tanh approximation of GELU (BERT activation)
    return 0.5 * x * (1.0 + jnp.tanh(0.7978845608028654 * (x + 0.044715 * x * x * x)))


def bert_classifier_kernel(
    x_ref, bias_ref,
    wq_ref, bq_ref, wk_ref, bk_ref, wv_ref, bv_ref, wo_ref, bo_ref,
    ln1g_ref, ln1b_ref, w1_ref, b1_ref, w2_ref, b2_ref, ln2g_ref, ln2b_ref,
    wcls_ref, bcls_ref,
    out_ref,
    x2_ref,
):
    l = pl.program_id(1)                      # layer index (inner, "arbitrary" axis)
    scale = 1.0 / math.sqrt(DH)

    @pl.when(l == 0)
    def _init():
        x2_ref[...] = x_ref[...]              # (S, H) embeddings of this batch row

    x2 = x2_ref[...]                          # f32 residual stream (S, H)
    x2_bf = x2.astype(jnp.bfloat16)

    # ----- fused Q/K/V projections for all heads (bf16 MXU, f32 accumulation) -----
    q2 = jnp.dot(x2_bf, wq_ref[...], preferred_element_type=jnp.float32) + bq_ref[...]
    k2 = jnp.dot(x2_bf, wk_ref[...], preferred_element_type=jnp.float32) + bk_ref[...]
    v2 = jnp.dot(x2_bf, wv_ref[...], preferred_element_type=jnp.float32) + bv_ref[...]

    bias = bias_ref[...]                      # (1, S) additive key mask (hoisted)
    wo = wo_ref[...]                          # (H, H) bf16

    # ----- multi-head self-attention: per-head 2-D MXU dots -----
    # TODO(synk): at real S=512 the (S, S) scores per head would use key-block
    # (flash-style) tiling; at toy size the full tile fits trivially.
    attn = None
    for h in range(NH):                       # static, small
        sl = slice(h * DH, (h + 1) * DH)
        qh = q2[:, sl].astype(jnp.bfloat16)
        kh = k2[:, sl].astype(jnp.bfloat16)
        vh = v2[:, sl].astype(jnp.bfloat16)
        s = jax.lax.dot_general(qh, kh, (((1,), (1,)), ((), ())),
                                preferred_element_type=jnp.float32) * scale   # q @ k^T
        s = s + bias                                                          # mask keys
        s = s - jnp.max(s, axis=-1, keepdims=True)
        p = jnp.exp(s)
        p = p * pl.reciprocal(jnp.sum(p, axis=-1, keepdims=True), approx=True)
        ctx = jnp.dot(p.astype(jnp.bfloat16), vh,
                      preferred_element_type=jnp.float32)                     # (S, DH)
        # concat-over-heads @ Wo  ==  sum_h ctx_h @ Wo[h*DH:(h+1)*DH, :]
        part = jnp.dot(ctx.astype(jnp.bfloat16), wo[sl, :],
                       preferred_element_type=jnp.float32)
        attn = part if attn is None else attn + part
    attn = attn + bo_ref[...]

    x2 = _layernorm(x2 + attn, ln1g_ref[...], ln1b_ref[...])

    # ----- feed-forward (bf16 inputs, f32 accumulate, f32 elementwise) -----
    h1 = jnp.dot(x2.astype(jnp.bfloat16), w1_ref[...],
                 preferred_element_type=jnp.float32) + b1_ref[...]
    h1 = _gelu(h1)
    ffn = jnp.dot(h1.astype(jnp.bfloat16), w2_ref[...],
                  preferred_element_type=jnp.float32) + b2_ref[...]
    x2 = _layernorm(x2 + ffn, ln2g_ref[...], ln2b_ref[...])
    x2_ref[...] = x2

    # ----- CLS token -> Linear(H, 10) -> Softmax, lane-dense (padded to 128) -----
    @pl.when(l == L - 1)
    def _final():
        cls = x2[0:1, :]                                                      # result[:, 0, :]
        logits = jnp.dot(cls, wcls_ref[...],
                         preferred_element_type=jnp.float32) + bcls_ref[...]  # (1, C_PAD)
        col = jax.lax.broadcasted_iota(jnp.int32, (1, C_PAD), 1)
        logits = jnp.where(col < C, logits, -1e30)                            # mask padding
        logits = logits - jnp.max(logits, axis=-1, keepdims=True)
        e = jnp.exp(logits)
        out_ref[...] = e * pl.reciprocal(jnp.sum(e, axis=-1, keepdims=True), approx=True)


def _per_layer(d0, d1):
    return pl.BlockSpec((None, d0, d1), lambda b, l: (l, 0, 0))


def _per_batch(d0, d1):
    return pl.BlockSpec((None, d0, d1), lambda b, l: (b, 0, 0))


def _shared(d0, d1):
    return pl.BlockSpec((d0, d1), lambda b, l: (0, 0))


@jax.jit
def bert_classifier_forward(x_emb, attn_bias, kparams):
    args = (x_emb, attn_bias) + tuple(kparams)
    in_specs = [
        _per_batch(S, H),        # x_emb      (B, S, H)
        _per_batch(1, S),        # attn_bias  (B, 1, S)
        _per_layer(H, H),        # wq  (bf16)
        _per_layer(1, H),        # bq
        _per_layer(H, H),        # wk  (bf16)
        _per_layer(1, H),        # bk
        _per_layer(H, H),        # wv  (bf16)
        _per_layer(1, H),        # bv
        _per_layer(H, H),        # wo  (bf16)
        _per_layer(1, H),        # bo
        _per_layer(1, H),        # ln1 gamma
        _per_layer(1, H),        # ln1 beta
        _per_layer(H, F),        # w1  (bf16)
        _per_layer(1, F),        # b1
        _per_layer(F, H),        # w2  (bf16)
        _per_layer(1, H),        # b2
        _per_layer(1, H),        # ln2 gamma
        _per_layer(1, H),        # ln2 beta
        _shared(H, C_PAD),       # wcls (padded, f32)
        _shared(1, C_PAD),       # bcls (padded, f32)
    ]
    out = pl.pallas_call(
        bert_classifier_kernel,
        out_shape=jax.ShapeDtypeStruct((B, 1, C_PAD), jnp.float32),
        grid_spec=pltpu.PrefetchScalarGridSpec(
            num_scalar_prefetch=0,
            grid=(B, L),                                   # (batch rows, layers)
            in_specs=in_specs,
            out_specs=pl.BlockSpec((None, 1, C_PAD), lambda b, l: (b, 0, 0)),
            scratch_shapes=[pltpu.VMEM((S, H), jnp.float32)],   # persistent residual stream
        ),
        compiler_params=pltpu.CompilerParams(
            dimension_semantics=("parallel", "arbitrary"),
            vmem_limit_bytes=32 * 1024 * 1024,             # explicit budget (v7x headroom)
        ),
    )(*args)
    return out.reshape(B, C_PAD)[:, :C]


# ---------------- plain-JAX reference (same math, f32, for verification) ----------------
def reference_forward(x_emb, mask, params):
    (wq, bq, wk, bk, wv, bv, wo, bo, ln1g, ln1b,
     w1, b1, w2, b2, ln2g, ln2b, wcls, bcls) = params
    x2 = x_emb.reshape(B * S, H)
    attn_bias = (mask - 1.0) * 1e9
    scale = 1.0 / math.sqrt(DH)
    for l in range(L):
        q = (x2 @ wq[l] + bq[l]).reshape(B, S, H)
        k = (x2 @ wk[l] + bk[l]).reshape(B, S, H)
        v = (x2 @ wv[l] + bv[l]).reshape(B, S, H)
        attn_out2 = jnp.zeros((B * S, H)) + bo[l]
        for h in range(NH):
            sl = slice(h * DH, (h + 1) * DH)
            scores = jnp.einsum('bqd,bkd->bqk', q[:, :, sl], k[:, :, sl]) * scale
            scores = scores + attn_bias[:, None, :]
            p = jax.nn.softmax(scores, axis=-1)
            ctx_h = jnp.einsum('bqk,bkd->bqd', p, v[:, :, sl])
            attn_out2 = attn_out2 + ctx_h.reshape(B * S, DH) @ wo[l][sl, :]
        x2 = _layernorm(x2 + attn_out2, ln1g[l], ln1b[l])
        h2 = _gelu(x2 @ w1[l] + b1[l])
        x2 = _layernorm(x2 + h2 @ w2[l] + b2[l], ln2g[l], ln2b[l])
    cls = x2.reshape(B, S, H)[:, 0, :]
    return jax.nn.softmax(cls @ wcls + bcls, axis=-1)


def init_params(key):
    ks = jax.random.split(key, 8)
    std = 0.02
    wq = jax.random.normal(ks[0], (L, H, H), jnp.float32) * std
    wk = jax.random.normal(ks[1], (L, H, H), jnp.float32) * std
    wv = jax.random.normal(ks[2], (L, H, H), jnp.float32) * std
    wo = jax.random.normal(ks[3], (L, H, H), jnp.float32) * std
    w1 = jax.random.normal(ks[4], (L, H, F), jnp.float32) * std
    w2 = jax.random.normal(ks[5], (L, F, H), jnp.float32) * std
    wcls = jax.random.normal(ks[6], (H, C), jnp.float32) * std
    zeros_h = jnp.zeros((L, 1, H), jnp.float32)
    ones_h = jnp.ones((L, 1, H), jnp.float32)
    zeros_f = jnp.zeros((L, 1, F), jnp.float32)
    return (wq, zeros_h, wk, zeros_h, wv, zeros_h, wo, zeros_h,
            ones_h, zeros_h, w1, zeros_f, w2, zeros_h, ones_h, zeros_h,
            wcls, jnp.zeros((1, C), jnp.float32))


def prepare_kernel_params(params):
    """bf16 weight matrices (half DMA/VMEM) + lane-padded classifier head."""
    (wq, bq, wk, bk, wv, bv, wo, bo, ln1g, ln1b,
     w1, b1, w2, b2, ln2g, ln2b, wcls, bcls) = params
    bf = lambda a: a.astype(jnp.bfloat16)
    wcls_p = jnp.zeros((H, C_PAD), jnp.float32).at[:, :C].set(wcls)
    bcls_p = jnp.zeros((1, C_PAD), jnp.float32).at[:, :C].set(bcls)
    return (bf(wq), bq, bf(wk), bk, bf(wv), bv, bf(wo), bo, ln1g, ln1b,
            bf(w1), b1, bf(w2), b2, ln2g, ln2b, wcls_p, bcls_p)


if __name__ == "__main__":
    key = jax.random.PRNGKey(0)
    k_ids, k_tok, k_pos, k_par = jax.random.split(key, 4)

    # synthetic "tokenized" batch (tokenizer has no Pallas equivalent)
    # TODO(synk): real module runs BertTokenizer + pretrained legal-bert weights.
    input_ids = jax.random.randint(k_ids, (B, S), 0, VOCAB)
    mask = jnp.ones((B, S), jnp.float32).at[1, 6:].set(0.0)   # pad tail of 2nd seq

    # embedding lookup (glue; gather stays in plain JAX) + embedding LayerNorm
    tok_emb = jax.random.normal(k_tok, (VOCAB, H), jnp.float32) * 0.02
    pos_emb = jax.random.normal(k_pos, (S, H), jnp.float32) * 0.02
    x_emb = _layernorm(tok_emb[input_ids] + pos_emb[None, :, :],
                       jnp.ones((H,)), jnp.zeros((H,)))

    # additive attention bias, hoisted out of the kernel (loop-invariant)
    attn_bias = ((mask - 1.0) * 1e9).reshape(B, 1, S)

    params = init_params(k_par)
    kparams = prepare_kernel_params(params)

    out = bert_classifier_forward(x_emb, attn_bias, kparams)
    out = jax.block_until_ready(out)

    ref = reference_forward(x_emb, mask, params)
    assert out.shape == (B, C)
    # bf16 matmuls + approx reciprocal vs f32 reference -> loosened tolerances
    assert jnp.allclose(jnp.sum(out, axis=-1), 1.0, atol=2e-2)
    assert jnp.allclose(out, ref, atol=2e-2, rtol=2e-2)

    print("KERNEL_OK")
</pallas_src>

<mosaic_0001>
module attributes {stable_mosaic.version = 11 : i64} {
  func.func @bert_classifier_kernel(%arg0: i32, %arg1: i32, %arg2: memref<1x8x32xf32, #tpu.memory_space<vmem>>, %arg3: memref<1x1x8xf32, #tpu.memory_space<vmem>>, %arg4: memref<1x32x32xbf16, #tpu.memory_space<vmem>>, %arg5: memref<1x1x32xf32, #tpu.memory_space<vmem>>, %arg6: memref<1x32x32xbf16, #tpu.memory_space<vmem>>, %arg7: memref<1x1x32xf32, #tpu.memory_space<vmem>>, %arg8: memref<1x32x32xbf16, #tpu.memory_space<vmem>>, %arg9: memref<1x1x32xf32, #tpu.memory_space<vmem>>, %arg10: memref<1x32x32xbf16, #tpu.memory_space<vmem>>, %arg11: memref<1x1x32xf32, #tpu.memory_space<vmem>>, %arg12: memref<1x1x32xf32, #tpu.memory_space<vmem>>, %arg13: memref<1x1x32xf32, #tpu.memory_space<vmem>>, %arg14: memref<1x32x64xbf16, #tpu.memory_space<vmem>>, %arg15: memref<1x1x64xf32, #tpu.memory_space<vmem>>, %arg16: memref<1x64x32xbf16, #tpu.memory_space<vmem>>, %arg17: memref<1x1x32xf32, #tpu.memory_space<vmem>>, %arg18: memref<1x1x32xf32, #tpu.memory_space<vmem>>, %arg19: memref<1x1x32xf32, #tpu.memory_space<vmem>>, %arg20: memref<32x128xf32, #tpu.memory_space<vmem>>, %arg21: memref<1x128xf32, #tpu.memory_space<vmem>>, %arg22: memref<1x1x128xf32, #tpu.memory_space<vmem>>, %arg23: memref<8x32xf32, #tpu.memory_space<vmem>>) attributes {dimension_semantics = [#tpu.dimension_semantics<parallel>, #tpu.dimension_semantics<arbitrary>], iteration_bounds = array<i64: 2, 2>, scalar_prefetch = 0 : i64, scratch_operands = 1 : i64, tpu.core_type = #tpu.core_type<tc>, window_params = [{transform_indices = @transform_0, window_bounds = array<i64: 1, 8, 32>}, {transform_indices = @transform_1, window_bounds = array<i64: 1, 1, 8>}, {transform_indices = @transform_2, window_bounds = array<i64: 1, 32, 32>}, {transform_indices = @transform_3, window_bounds = array<i64: 1, 1, 32>}, {transform_indices = @transform_4, window_bounds = array<i64: 1, 32, 32>}, {transform_indices = @transform_5, window_bounds = array<i64: 1, 1, 32>}, {transform_indices = @transform_6, window_bounds = array<i64: 1, 32, 32>}, {transform_indices = @transform_7, window_bounds = array<i64: 1, 1, 32>}, {transform_indices = @transform_8, window_bounds = array<i64: 1, 32, 32>}, {transform_indices = @transform_9, window_bounds = array<i64: 1, 1, 32>}, {transform_indices = @transform_10, window_bounds = array<i64: 1, 1, 32>}, {transform_indices = @transform_11, window_bounds = array<i64: 1, 1, 32>}, {transform_indices = @transform_12, window_bounds = array<i64: 1, 32, 64>}, {transform_indices = @transform_13, window_bounds = array<i64: 1, 1, 64>}, {transform_indices = @transform_14, window_bounds = array<i64: 1, 64, 32>}, {transform_indices = @transform_15, window_bounds = array<i64: 1, 1, 32>}, {transform_indices = @transform_16, window_bounds = array<i64: 1, 1, 32>}, {transform_indices = @transform_17, window_bounds = array<i64: 1, 1, 32>}, {pipeline_mode = #tpu.pipeline_mode<synchronous>, transform_indices = @transform_18, window_bounds = array<i64: 32, 128>}, {pipeline_mode = #tpu.pipeline_mode<synchronous>, transform_indices = @transform_19, window_bounds = array<i64: 1, 128>}, {transform_indices = @transform_20, window_bounds = array<i64: 1, 1, 128>}]} {
    %c0_i32 = arith.constant 0 : i32
    %0 = arith.cmpi eq, %arg1, %c0_i32 : i32
    %1 = arith.extui %0 : i1 to i32
    %c0_i32_0 = arith.constant 0 : i32
    %2 = arith.cmpi ne, %1, %c0_i32_0 : i32
    scf.if %2 {
      %c0_98 = arith.constant 0 : index
      %c0_99 = arith.constant 0 : index
      %c0_100 = arith.constant 0 : index
      %228 = vector.load %arg2[%c0_98, %c0_99, %c0_100] : memref<1x8x32xf32, #tpu.memory_space<vmem>>, vector<1x8x32xf32>
      %229 = vector.shape_cast %228 : vector<1x8x32xf32> to vector<8x32xf32>
      %c0_101 = arith.constant 0 : index
      %c0_102 = arith.constant 0 : index
      %230 = vector.load %arg23[%c0_101, %c0_102] : memref<8x32xf32, #tpu.memory_space<vmem>>, vector<8x32xf32>
      tpu.vector_store %arg23[%c0_101, %c0_102], %229 {strides = array<i32>} : memref<8x32xf32, #tpu.memory_space<vmem>>, vector<8x32xf32>,
    } else {
    }
    %c0 = arith.constant 0 : index
    %c0_1 = arith.constant 0 : index
    %3 = vector.load %arg23[%c0, %c0_1] : memref<8x32xf32, #tpu.memory_space<vmem>>, vector<8x32xf32>
    %4 = arith.truncf %3 : vector<8x32xf32> to vector<8x32xbf16>
    %c0_2 = arith.constant 0 : index
    %c0_3 = arith.constant 0 : index
    %c0_4 = arith.constant 0 : index
    %5 = vector.load %arg4[%c0_2, %c0_3, %c0_4] : memref<1x32x32xbf16, #tpu.memory_space<vmem>>, vector<1x32x32xbf16>
    %6 = vector.shape_cast %5 : vector<1x32x32xbf16> to vector<32x32xbf16>
    %cst = arith.constant dense<0.000000e+00> : vector<8x32xf32>
    %7 = tpu.matmul %4, %6, %cst {dimension_numbers = #tpu.dot_dimension_numbers<[1], [0], [0], [1], [0, 0, 1, 1], [], []>} : vector<8x32xbf16>, vector<32x32xbf16>, vector<8x32xf32> -> vector<8x32xf32>
    %c0_5 = arith.constant 0 : index
    %c0_6 = arith.constant 0 : index
    %c0_7 = arith.constant 0 : index
    %8 = vector.load %arg5[%c0_5, %c0_6, %c0_7] : memref<1x1x32xf32, #tpu.memory_space<vmem>>, vector<1x1x32xf32>
    %9 = vector.shape_cast %8 : vector<1x1x32xf32> to vector<1x32xf32>
    %10 = vector.broadcast %9 : vector<1x32xf32> to vector<8x32xf32>
    %11 = arith.addf %7, %10 : vector<8x32xf32>
    %c0_8 = arith.constant 0 : index
    %c0_9 = arith.constant 0 : index
    %c0_10 = arith.constant 0 : index
    %12 = vector.load %arg6[%c0_8, %c0_9, %c0_10] : memref<1x32x32xbf16, #tpu.memory_space<vmem>>, vector<1x32x32xbf16>
    %13 = vector.shape_cast %12 : vector<1x32x32xbf16> to vector<32x32xbf16>
    %cst_11 = arith.constant dense<0.000000e+00> : vector<8x32xf32>
    %14 = tpu.matmul %4, %13, %cst_11 {dimension_numbers = #tpu.dot_dimension_numbers<[1], [0], [0], [1], [0, 0, 1, 1], [], []>} : vector<8x32xbf16>, vector<32x32xbf16>, vector<8x32xf32> -> vector<8x32xf32>
    %c0_12 = arith.constant 0 : index
    %c0_13 = arith.constant 0 : index
    %c0_14 = arith.constant 0 : index
    %15 = vector.load %arg7[%c0_12, %c0_13, %c0_14] : memref<1x1x32xf32, #tpu.memory_space<vmem>>, vector<1x1x32xf32>
    %16 = vector.shape_cast %15 : vector<1x1x32xf32> to vector<1x32xf32>
    %17 = vector.broadcast %16 : vector<1x32xf32> to vector<8x32xf32>
    %18 = arith.addf %14, %17 : vector<8x32xf32>
    %c0_15 = arith.constant 0 : index
    %c0_16 = arith.constant 0 : index
    %c0_17 = arith.constant 0 : index
    %19 = vector.load %arg8[%c0_15, %c0_16, %c0_17] : memref<1x32x32xbf16, #tpu.memory_space<vmem>>, vector<1x32x32xbf16>
    %20 = vector.shape_cast %19 : vector<1x32x32xbf16> to vector<32x32xbf16>
    %cst_18 = arith.constant dense<0.000000e+00> : vector<8x32xf32>
    %21 = tpu.matmul %4, %20, %cst_18 {dimension_numbers = #tpu.dot_dimension_numbers<[1], [0], [0], [1], [0, 0, 1, 1], [], []>} : vector<8x32xbf16>, vector<32x32xbf16>, vector<8x32xf32> -> vector<8x32xf32>
    %c0_19 = arith.constant 0 : index
    %c0_20 = arith.constant 0 : index
    %c0_21 = arith.constant 0 : index
    %22 = vector.load %arg9[%c0_19, %c0_20, %c0_21] : memref<1x1x32xf32, #tpu.memory_space<vmem>>, vector<1x1x32xf32>
    %23 = vector.shape_cast %22 : vector<1x1x32xf32> to vector<1x32xf32>
    %24 = vector.broadcast %23 : vector<1x32xf32> to vector<8x32xf32>
    %25 = arith.addf %21, %24 : vector<8x32xf32>
    %c0_22 = arith.constant 0 : index
    %c0_23 = arith.constant 0 : index
    %c0_24 = arith.constant 0 : index
    %26 = vector.load %arg3[%c0_22, %c0_23, %c0_24] : memref<1x1x8xf32, #tpu.memory_space<vmem>>, vector<1x1x8xf32>
    %27 = vector.shape_cast %26 : vector<1x1x8xf32> to vector<1x8xf32>
    %c0_25 = arith.constant 0 : index
    %c0_26 = arith.constant 0 : index
    %c0_27 = arith.constant 0 : index
    %28 = vector.load %arg10[%c0_25, %c0_26, %c0_27] : memref<1x32x32xbf16, #tpu.memory_space<vmem>>, vector<1x32x32xbf16>
    %29 = vector.shape_cast %28 : vector<1x32x32xbf16> to vector<32x32xbf16>
    %30 = vector.extract_strided_slice %11 {offsets = [0, 0], sizes = [8, 8], strides = [1, 1]} : vector<8x32xf32> to vector<8x8xf32>
    %31 = arith.truncf %30 : vector<8x8xf32> to vector<8x8xbf16>
    %32 = vector.extract_strided_slice %18 {offsets = [0, 0], sizes = [8, 8], strides = [1, 1]} : vector<8x32xf32> to vector<8x8xf32>
    %33 = arith.truncf %32 : vector<8x8xf32> to vector<8x8xbf16>
    %34 = vector.extract_strided_slice %25 {offsets = [0, 0], sizes = [8, 8], strides = [1, 1]} : vector<8x32xf32> to vector<8x8xf32>
    %35 = arith.truncf %34 : vector<8x8xf32> to vector<8x8xbf16>
    %cst_28 = arith.constant dense<0.000000e+00> : vector<8x8xf32>
    %36 = tpu.matmul %31, %33, %cst_28 {dimension_numbers = #tpu.dot_dimension_numbers<[1], [1], [0], [0], [0, 0, 1, 0], [], []>} : vector<8x8xbf16>, vector<8x8xbf16>, vector<8x8xf32> -> vector<8x8xf32>
    %cst_29 = arith.constant 0.353553385 : f32
    %37 = vector.broadcast %cst_29 : f32 to vector<8x8xf32>
    %38 = arith.mulf %36, %37 : vector<8x8xf32>
    %39 = vector.broadcast %27 : vector<1x8xf32> to vector<8x8xf32>
    %40 = arith.addf %38, %39 : vector<8x8xf32>
    %cst_30 = arith.constant dense<0xFF800000> : vector<8xf32>
    %41 = vector.multi_reduction <maximumf>, %40, %cst_30 [1] : vector<8x8xf32> to vector<8xf32>
    %42 = vector.shape_cast %41 : vector<8xf32> to vector<8x1xf32>
    %43 = vector.broadcast %42 : vector<8x1xf32> to vector<8x8xf32>
    %44 = arith.subf %40, %43 : vector<8x8xf32>
    %45 = math.exp %44 : vector<8x8xf32>
    %cst_31 = arith.constant dense<0.000000e+00> : vector<8xf32>
    %46 = vector.multi_reduction <add>, %45, %cst_31 [1] : vector<8x8xf32> to vector<8xf32>
    %47 = vector.shape_cast %46 : vector<8xf32> to vector<8x1xf32>
    %48 = tpu.reciprocal %47 {approx = true} : vector<8x1xf32> -> vector<8x1xf32>
    %49 = vector.broadcast %48 : vector<8x1xf32> to vector<8x8xf32>
    %50 = arith.mulf %45, %49 : vector<8x8xf32>
    %51 = arith.truncf %50 : vector<8x8xf32> to vector<8x8xbf16>
    %cst_32 = arith.constant dense<0.000000e+00> : vector<8x8xf32>
    %52 = tpu.matmul %51, %35, %cst_32 {dimension_numbers = #tpu.dot_dimension_numbers<[1], [0], [0], [1], [0, 0, 1, 1], [], []>} : vector<8x8xbf16>, vector<8x8xbf16>, vector<8x8xf32> -> vector<8x8xf32>
    %53 = arith.truncf %52 : vector<8x8xf32> to vector<8x8xbf16>
    %54 = vector.extract_strided_slice %29 {offsets = [0, 0], sizes = [8, 32], strides = [1, 1]} : vector<32x32xbf16> to vector<8x32xbf16>
    %cst_33 = arith.constant dense<0.000000e+00> : vector<8x32xf32>
    %55 = tpu.matmul %53, %54, %cst_33 {dimension_numbers = #tpu.dot_dimension_numbers<[1], [0], [0], [1], [0, 0, 1, 1], [], []>} : vector<8x8xbf16>, vector<8x32xbf16>, vector<8x32xf32> -> vector<8x32xf32>
    %56 = vector.extract_strided_slice %11 {offsets = [0, 8], sizes = [8, 8], strides = [1, 1]} : vector<8x32xf32> to vector<8x8xf32>
    %57 = arith.truncf %56 : vector<8x8xf32> to vector<8x8xbf16>
    %58 = vector.extract_strided_slice %18 {offsets = [0, 8], sizes = [8, 8], strides = [1, 1]} : vector<8x32xf32> to vector<8x8xf32>
    %59 = arith.truncf %58 : vector<8x8xf32> to vector<8x8xbf16>
    %60 = vector.extract_strided_slice %25 {offsets = [0, 8], sizes = [8, 8], strides = [1, 1]} : vector<8x32xf32> to vector<8x8xf32>
    %61 = arith.truncf %60 : vector<8x8xf32> to vector<8x8xbf16>
    %cst_34 = arith.constant dense<0.000000e+00> : vector<8x8xf32>
    %62 = tpu.matmul %57, %59, %cst_34 {dimension_numbers = #tpu.dot_dimension_numbers<[1], [1], [0], [0], [0, 0, 1, 0], [], []>} : vector<8x8xbf16>, vector<8x8xbf16>, vector<8x8xf32> -> vector<8x8xf32>
    %cst_35 = arith.constant 0.353553385 : f32
    %63 = vector.broadcast %cst_35 : f32 to vector<8x8xf32>
    %64 = arith.mulf %62, %63 : vector<8x8xf32>
    %65 = vector.broadcast %27 : vector<1x8xf32> to vector<8x8xf32>
    %66 = arith.addf %64, %65 : vector<8x8xf32>
    %cst_36 = arith.constant dense<0xFF800000> : vector<8xf32>
    %67 = vector.multi_reduction <maximumf>, %66, %cst_36 [1] : vector<8x8xf32> to vector<8xf32>
    %68 = vector.shape_cast %67 : vector<8xf32> to vector<8x1xf32>
    %69 = vector.broadcast %68 : vector<8x1xf32> to vector<8x8xf32>
    %70 = arith.subf %66, %69 : vector<8x8xf32>
    %71 = math.exp %70 : vector<8x8xf32>
    %cst_37 = arith.constant dense<0.000000e+00> : vector<8xf32>
    %72 = vector.multi_reduction <add>, %71, %cst_37 [1] : vector<8x8xf32> to vector<8xf32>
    %73 = vector.shape_cast %72 : vector<8xf32> to vector<8x1xf32>
    %74 = tpu.reciprocal %73 {approx = true} : vector<8x1xf32> -> vector<8x1xf32>
    %75 = vector.broadcast %74 : vector<8x1xf32> to vector<8x8xf32>
    %76 = arith.mulf %71, %75 : vector<8x8xf32>
    %77 = arith.truncf %76 : vector<8x8xf32> to vector<8x8xbf16>
    %cst_38 = arith.constant dense<0.000000e+00> : vector<8x8xf32>
    %78 = tpu.matmul %77, %61, %cst_38 {dimension_numbers = #tpu.dot_dimension_numbers<[1], [0], [0], [1], [0, 0, 1, 1], [], []>} : vector<8x8xbf16>, vector<8x8xbf16>, vector<8x8xf32> -> vector<8x8xf32>
    %79 = arith.truncf %78 : vector<8x8xf32> to vector<8x8xbf16>
    %80 = vector.extract_strided_slice %29 {offsets = [8, 0], sizes = [8, 32], strides = [1, 1]} : vector<32x32xbf16> to vector<8x32xbf16>
    %cst_39 = arith.constant dense<0.000000e+00> : vector<8x32xf32>
    %81 = tpu.matmul %79, %80, %cst_39 {dimension_numbers = #tpu.dot_dimension_numbers<[1], [0], [0], [1], [0, 0, 1, 1], [], []>} : vector<8x8xbf16>, vector<8x32xbf16>, vector<8x32xf32> -> vector<8x32xf32>
    %82 = arith.addf %55, %81 : vector<8x32xf32>
    %83 = vector.extract_strided_slice %11 {offsets = [0, 16], sizes = [8, 8], strides = [1, 1]} : vector<8x32xf32> to vector<8x8xf32>
    %84 = arith.truncf %83 : vector<8x8xf32> to vector<8x8xbf16>
    %85 = vector.extract_strided_slice %18 {offsets = [0, 16], sizes = [8, 8], strides = [1, 1]} : vector<8x32xf32> to vector<8x8xf32>
    %86 = arith.truncf %85 : vector<8x8xf32> to vector<8x8xbf16>
    %87 = vector.extract_strided_slice %25 {offsets = [0, 16], sizes = [8, 8], strides = [1, 1]} : vector<8x32xf32> to vector<8x8xf32>
    %88 = arith.truncf %87 : vector<8x8xf32> to vector<8x8xbf16>
    %cst_40 = arith.constant dense<0.000000e+00> : vector<8x8xf32>
    %89 = tpu.matmul %84, %86, %cst_40 {dimension_numbers = #tpu.dot_dimension_numbers<[1], [1], [0], [0], [0, 0, 1, 0], [], []>} : vector<8x8xbf16>, vector<8x8xbf16>, vector<8x8xf32> -> vector<8x8xf32>
    %cst_41 = arith.constant 0.353553385 : f32
    %90 = vector.broadcast %cst_41 : f32 to vector<8x8xf32>
    %91 = arith.mulf %89, %90 : vector<8x8xf32>
    %92 = vector.broadcast %27 : vector<1x8xf32> to vector<8x8xf32>
    %93 = arith.addf %91, %92 : vector<8x8xf32>
    %cst_42 = arith.constant dense<0xFF800000> : vector<8xf32>
    %94 = vector.multi_reduction <maximumf>, %93, %cst_42 [1] : vector<8x8xf32> to vector<8xf32>
    %95 = vector.shape_cast %94 : vector<8xf32> to vector<8x1xf32>
    %96 = vector.broadcast %95 : vector<8x1xf32> to vector<8x8xf32>
    %97 = arith.subf %93, %96 : vector<8x8xf32>
    %98 = math.exp %97 : vector<8x8xf32>
    %cst_43 = arith.constant dense<0.000000e+00> : vector<8xf32>
    %99 = vector.multi_reduction <add>, %98, %cst_43 [1] : vector<8x8xf32> to vector<8xf32>
    %100 = vector.shape_cast %99 : vector<8xf32> to vector<8x1xf32>
    %101 = tpu.reciprocal %100 {approx = true} : vector<8x1xf32> -> vector<8x1xf32>
    %102 = vector.broadcast %101 : vector<8x1xf32> to vector<8x8xf32>
    %103 = arith.mulf %98, %102 : vector<8x8xf32>
    %104 = arith.truncf %103 : vector<8x8xf32> to vector<8x8xbf16>
    %cst_44 = arith.constant dense<0.000000e+00> : vector<8x8xf32>
    %105 = tpu.matmul %104, %88, %cst_44 {dimension_numbers = #tpu.dot_dimension_numbers<[1], [0], [0], [1], [0, 0, 1, 1], [], []>} : vector<8x8xbf16>, vector<8x8xbf16>, vector<8x8xf32> -> vector<8x8xf32>
    %106 = arith.truncf %105 : vector<8x8xf32> to vector<8x8xbf16>
    %107 = vector.extract_strided_slice %29 {offsets = [16, 0], sizes = [8, 32], strides = [1, 1]} : vector<32x32xbf16> to vector<8x32xbf16>
    %cst_45 = arith.constant dense<0.000000e+00> : vector<8x32xf32>
    %108 = tpu.matmul %106, %107, %cst_45 {dimension_numbers = #tpu.dot_dimension_numbers<[1], [0], [0], [1], [0, 0, 1, 1], [], []>} : vector<8x8xbf16>, vector<8x32xbf16>, vector<8x32xf32> -> vector<8x32xf32>
    %109 = arith.addf %82, %108 : vector<8x32xf32>
    %110 = vector.extract_strided_slice %11 {offsets = [0, 24], sizes = [8, 8], strides = [1, 1]} : vector<8x32xf32> to vector<8x8xf32>
    %111 = arith.truncf %110 : vector<8x8xf32> to vector<8x8xbf16>
    %112 = vector.extract_strided_slice %18 {offsets = [0, 24], sizes = [8, 8], strides = [1, 1]} : vector<8x32xf32> to vector<8x8xf32>
    %113 = arith.truncf %112 : vector<8x8xf32> to vector<8x8xbf16>
    %114 = vector.extract_strided_slice %25 {offsets = [0, 24], sizes = [8, 8], strides = [1, 1]} : vector<8x32xf32> to vector<8x8xf32>
    %115 = arith.truncf %114 : vector<8x8xf32> to vector<8x8xbf16>
    %cst_46 = arith.constant dense<0.000000e+00> : vector<8x8xf32>
    %116 = tpu.matmul %111, %113, %cst_46 {dimension_numbers = #tpu.dot_dimension_numbers<[1], [1], [0], [0], [0, 0, 1, 0], [], []>} : vector<8x8xbf16>, vector<8x8xbf16>, vector<8x8xf32> -> vector<8x8xf32>
    %cst_47 = arith.constant 0.353553385 : f32
    %117 = vector.broadcast %cst_47 : f32 to vector<8x8xf32>
    %118 = arith.mulf %116, %117 : vector<8x8xf32>
    %119 = vector.broadcast %27 : vector<1x8xf32> to vector<8x8xf32>
    %120 = arith.addf %118, %119 : vector<8x8xf32>
    %cst_48 = arith.constant dense<0xFF800000> : vector<8xf32>
    %121 = vector.multi_reduction <maximumf>, %120, %cst_48 [1] : vector<8x8xf32> to vector<8xf32>
    %122 = vector.shape_cast %121 : vector<8xf32> to vector<8x1xf32>
    %123 = vector.broadcast %122 : vector<8x1xf32> to vector<8x8xf32>
    %124 = arith.subf %120, %123 : vector<8x8xf32>
    %125 = math.exp %124 : vector<8x8xf32>
    %cst_49 = arith.constant dense<0.000000e+00> : vector<8xf32>
    %126 = vector.multi_reduction <add>, %125, %cst_49 [1] : vector<8x8xf32> to vector<8xf32>
    %127 = vector.shape_cast %126 : vector<8xf32> to vector<8x1xf32>
    %128 = tpu.reciprocal %127 {approx = true} : vector<8x1xf32> -> vector<8x1xf32>
    %129 = vector.broadcast %128 : vector<8x1xf32> to vector<8x8xf32>
    %130 = arith.mulf %125, %129 : vector<8x8xf32>
    %131 = arith.truncf %130 : vector<8x8xf32> to vector<8x8xbf16>
    %cst_50 = arith.constant dense<0.000000e+00> : vector<8x8xf32>
    %132 = tpu.matmul %131, %115, %cst_50 {dimension_numbers = #tpu.dot_dimension_numbers<[1], [0], [0], [1], [0, 0, 1, 1], [], []>} : vector<8x8xbf16>, vector<8x8xbf16>, vector<8x8xf32> -> vector<8x8xf32>
    %133 = arith.truncf %132 : vector<8x8xf32> to vector<8x8xbf16>
    %134 = vector.extract_strided_slice %29 {offsets = [24, 0], sizes = [8, 32], strides = [1, 1]} : vector<32x32xbf16> to vector<8x32xbf16>
    %cst_51 = arith.constant dense<0.000000e+00> : vector<8x32xf32>
    %135 = tpu.matmul %133, %134, %cst_51 {dimension_numbers = #tpu.dot_dimension_numbers<[1], [0], [0], [1], [0, 0, 1, 1], [], []>} : vector<8x8xbf16>, vector<8x32xbf16>, vector<8x32xf32> -> vector<8x32xf32>
    %136 = arith.addf %109, %135 : vector<8x32xf32>
    %c0_52 = arith.constant 0 : index
    %c0_53 = arith.constant 0 : index
    %c0_54 = arith.constant 0 : index
    %137 = vector.load %arg11[%c0_52, %c0_53, %c0_54] : memref<1x1x32xf32, #tpu.memory_space<vmem>>, vector<1x1x32xf32>
    %138 = vector.shape_cast %137 : vector<1x1x32xf32> to vector<1x32xf32>
    %139 = vector.broadcast %138 : vector<1x32xf32> to vector<8x32xf32>
    %140 = arith.addf %136, %139 : vector<8x32xf32>
    %141 = arith.addf %3, %140 : vector<8x32xf32>
    %c0_55 = arith.constant 0 : index
    %c0_56 = arith.constant 0 : index
    %c0_57 = arith.constant 0 : index
    %142 = vector.load %arg12[%c0_55, %c0_56, %c0_57] : memref<1x1x32xf32, #tpu.memory_space<vmem>>, vector<1x1x32xf32>
    %143 = vector.shape_cast %142 : vector<1x1x32xf32> to vector<1x32xf32>
    %c0_58 = arith.constant 0 : index
    %c0_59 = arith.constant 0 : index
    %c0_60 = arith.constant 0 : index
    %144 = vector.load %arg13[%c0_58, %c0_59, %c0_60] : memref<1x1x32xf32, #tpu.memory_space<vmem>>, vector<1x1x32xf32>
    %145 = vector.shape_cast %144 : vector<1x1x32xf32> to vector<1x32xf32>
    %cst_61 = arith.constant dense<0.000000e+00> : vector<8xf32>
    %146 = vector.multi_reduction <add>, %141, %cst_61 [1] : vector<8x32xf32> to vector<8xf32>
    %147 = vector.shape_cast %146 : vector<8xf32> to vector<8x1xf32>
    %cst_62 = arith.constant 3.200000e+01 : f32
    %148 = vector.broadcast %cst_62 : f32 to vector<8x1xf32>
    %149 = arith.divf %147, %148 : vector<8x1xf32>
    %150 = vector.broadcast %149 : vector<8x1xf32> to vector<8x32xf32>
    %151 = arith.subf %141, %150 : vector<8x32xf32>
    %152 = arith.mulf %151, %151 : vector<8x32xf32>
    %cst_63 = arith.constant dense<0.000000e+00> : vector<8xf32>
    %153 = vector.multi_reduction <add>, %152, %cst_63 [1] : vector<8x32xf32> to vector<8xf32>
    %154 = vector.shape_cast %153 : vector<8xf32> to vector<8x1xf32>
    %cst_64 = arith.constant 3.200000e+01 : f32
    %155 = vector.broadcast %cst_64 : f32 to vector<8x1xf32>
    %156 = arith.divf %154, %155 : vector<8x1xf32>
    %157 = vector.broadcast %149 : vector<8x1xf32> to vector<8x32xf32>
    %158 = arith.subf %141, %157 : vector<8x32xf32>
    %cst_65 = arith.constant 9.99999996E-13 : f32
    %159 = vector.broadcast %cst_65 : f32 to vector<8x1xf32>
    %160 = arith.addf %156, %159 : vector<8x1xf32>
    %161 = math.rsqrt %160 : vector<8x1xf32>
    %162 = vector.broadcast %161 : vector<8x1xf32> to vector<8x32xf32>
    %163 = arith.mulf %158, %162 : vector<8x32xf32>
    %164 = vector.broadcast %143 : vector<1x32xf32> to vector<8x32xf32>
    %165 = arith.mulf %163, %164 : vector<8x32xf32>
    %166 = vector.broadcast %145 : vector<1x32xf32> to vector<8x32xf32>
    %167 = arith.addf %165, %166 : vector<8x32xf32>
    %168 = arith.truncf %167 : vector<8x32xf32> to vector<8x32xbf16>
    %c0_66 = arith.constant 0 : index
    %c0_67 = arith.constant 0 : index
    %c0_68 = arith.constant 0 : index
    %169 = vector.load %arg14[%c0_66, %c0_67, %c0_68] : memref<1x32x64xbf16, #tpu.memory_space<vmem>>, vector<1x32x64xbf16>
    %170 = vector.shape_cast %169 : vector<1x32x64xbf16> to vector<32x64xbf16>
    %cst_69 = arith.constant dense<0.000000e+00> : vector<8x64xf32>
    %171 = tpu.matmul %168, %170, %cst_69 {dimension_numbers = #tpu.dot_dimension_numbers<[1], [0], [0], [1], [0, 0, 1, 1], [], []>} : vector<8x32xbf16>, vector<32x64xbf16>, vector<8x64xf32> -> vector<8x64xf32>
    %c0_70 = arith.constant 0 : index
    %c0_71 = arith.constant 0 : index
    %c0_72 = arith.constant 0 : index
    %172 = vector.load %arg15[%c0_70, %c0_71, %c0_72] : memref<1x1x64xf32, #tpu.memory_space<vmem>>, vector<1x1x64xf32>
    %173 = vector.shape_cast %172 : vector<1x1x64xf32> to vector<1x64xf32>
    %174 = vector.broadcast %173 : vector<1x64xf32> to vector<8x64xf32>
    %175 = arith.addf %171, %174 : vector<8x64xf32>
    %cst_73 = arith.constant 5.000000e-01 : f32
    %176 = vector.broadcast %cst_73 : f32 to vector<8x64xf32>
    %177 = arith.mulf %176, %175 : vector<8x64xf32>
    %cst_74 = arith.constant 4.471500e-02 : f32
    %178 = vector.broadcast %cst_74 : f32 to vector<8x64xf32>
    %179 = arith.mulf %178, %175 : vector<8x64xf32>
    %180 = arith.mulf %179, %175 : vector<8x64xf32>
    %181 = arith.mulf %180, %175 : vector<8x64xf32>
    %182 = arith.addf %175, %181 : vector<8x64xf32>
    %cst_75 = arith.constant 0.797884583 : f32
    %183 = vector.broadcast %cst_75 : f32 to vector<8x64xf32>
    %184 = arith.mulf %183, %182 : vector<8x64xf32>
    %185 = math.tanh %184 : vector<8x64xf32>
    %cst_76 = arith.constant 1.000000e+00 : f32
    %186 = vector.broadcast %cst_76 : f32 to vector<8x64xf32>
    %187 = arith.addf %186, %185 : vector<8x64xf32>
    %188 = arith.mulf %177, %187 : vector<8x64xf32>
    %189 = arith.truncf %188 : vector<8x64xf32> to vector<8x64xbf16>
    %c0_77 = arith.constant 0 : index
    %c0_78 = arith.constant 0 : index
    %c0_79 = arith.constant 0 : index
    %190 = vector.load %arg16[%c0_77, %c0_78, %c0_79] : memref<1x64x32xbf16, #tpu.memory_space<vmem>>, vector<1x64x32xbf16>
    %191 = vector.shape_cast %190 : vector<1x64x32xbf16> to vector<64x32xbf16>
    %cst_80 = arith.constant dense<0.000000e+00> : vector<8x32xf32>
    %192 = tpu.matmul %189, %191, %cst_80 {dimension_numbers = #tpu.dot_dimension_numbers<[1], [0], [0], [1], [0, 0, 1, 1], [], []>} : vector<8x64xbf16>, vector<64x32xbf16>, vector<8x32xf32> -> vector<8x32xf32>
    %c0_81 = arith.constant 0 : index
    %c0_82 = arith.constant 0 : index
    %c0_83 = arith.constant 0 : index
    %193 = vector.load %arg17[%c0_81, %c0_82, %c0_83] : memref<1x1x32xf32, #tpu.memory_space<vmem>>, vector<1x1x32xf32>
    %194 = vector.shape_cast %193 : vector<1x1x32xf32> to vector<1x32xf32>
    %195 = vector.broadcast %194 : vector<1x32xf32> to vector<8x32xf32>
    %196 = arith.addf %192, %195 : vector<8x32xf32>
    %197 = arith.addf %167, %196 : vector<8x32xf32>
    %c0_84 = arith.constant 0 : index
    %c0_85 = arith.constant 0 : index
    %c0_86 = arith.constant 0 : index
    %198 = vector.load %arg18[%c0_84, %c0_85, %c0_86] : memref<1x1x32xf32, #tpu.memory_space<vmem>>, vector<1x1x32xf32>
    %199 = vector.shape_cast %198 : vector<1x1x32xf32> to vector<1x32xf32>
    %c0_87 = arith.constant 0 : index
    %c0_88 = arith.constant 0 : index
    %c0_89 = arith.constant 0 : index
    %200 = vector.load %arg19[%c0_87, %c0_88, %c0_89] : memref<1x1x32xf32, #tpu.memory_space<vmem>>, vector<1x1x32xf32>
    %201 = vector.shape_cast %200 : vector<1x1x32xf32> to vector<1x32xf32>
    %cst_90 = arith.constant dense<0.000000e+00> : vector<8xf32>
    %202 = vector.multi_reduction <add>, %197, %cst_90 [1] : vector<8x32xf32> to vector<8xf32>
    %203 = vector.shape_cast %202 : vector<8xf32> to vector<8x1xf32>
    %cst_91 = arith.constant 3.200000e+01 : f32
    %204 = vector.broadcast %cst_91 : f32 to vector<8x1xf32>
    %205 = arith.divf %203, %204 : vector<8x1xf32>
    %206 = vector.broadcast %205 : vector<8x1xf32> to vector<8x32xf32>
    %207 = arith.subf %197, %206 : vector<8x32xf32>
    %208 = arith.mulf %207, %207 : vector<8x32xf32>
    %cst_92 = arith.constant dense<0.000000e+00> : vector<8xf32>
    %209 = vector.multi_reduction <add>, %208, %cst_92 [1] : vector<8x32xf32> to vector<8xf32>
    %210 = vector.shape_cast %209 : vector<8xf32> to vector<8x1xf32>
    %cst_93 = arith.constant 3.200000e+01 : f32
    %211 = vector.broadcast %cst_93 : f32 to vector<8x1xf32>
    %212 = arith.divf %210, %211 : vector<8x1xf32>
    %213 = vector.broadcast %205 : vector<8x1xf32> to vector<8x32xf32>
    %214 = arith.subf %197, %213 : vector<8x32xf32>
    %cst_94 = arith.constant 9.99999996E-13 : f32
    %215 = vector.broadcast %cst_94 : f32 to vector<8x1xf32>
    %216 = arith.addf %212, %215 : vector<8x1xf32>
    %217 = math.rsqrt %216 : vector<8x1xf32>
    %218 = vector.broadcast %217 : vector<8x1xf32> to vector<8x32xf32>
    %219 = arith.mulf %214, %218 : vector<8x32xf32>
    %220 = vector.broadcast %199 : vector<1x32xf32> to vector<8x32xf32>
    %221 = arith.mulf %219, %220 : vector<8x32xf32>
    %222 = vector.broadcast %201 : vector<1x32xf32> to vector<8x32xf32>
    %223 = arith.addf %221, %222 : vector<8x32xf32>
    %c0_95 = arith.constant 0 : index
    %c0_96 = arith.constant 0 : index
    %224 = vector.load %arg23[%c0_95, %c0_96] : memref<8x32xf32, #tpu.memory_space<vmem>>, vector<8x32xf32>
    tpu.vector_store %arg23[%c0_95, %c0_96], %223 {strides = array<i32>} : memref<8x32xf32, #tpu.memory_space<vmem>>, vector<8x32xf32>,
    %c1_i32 = arith.constant 1 : i32
    %225 = arith.cmpi eq, %arg1, %c1_i32 : i32
    %226 = arith.extui %225 : i1 to i32
    %c0_i32_97 = arith.constant 0 : i32
    %227 = arith.cmpi ne, %226, %c0_i32_97 : i32
    scf.if %227 {
      %228 = vector.extract_strided_slice %223 {offsets = [0, 0], sizes = [1, 32], strides = [1, 1]} : vector<8x32xf32> to vector<1x32xf32>
      %c0_98 = arith.constant 0 : index
      %c0_99 = arith.constant 0 : index
      %229 = vector.load %arg20[%c0_98, %c0_99] : memref<32x128xf32, #tpu.memory_space<vmem>>, vector<32x128xf32>
      %cst_100 = arith.constant dense<0.000000e+00> : vector<1x128xf32>
      %230 = tpu.matmul %228, %229, %cst_100 {dimension_numbers = #tpu.dot_dimension_numbers<[1], [0], [0], [1], [0, 0, 1, 1], [], []>} : vector<1x32xf32>, vector<32x128xf32>, vector<1x128xf32> -> vector<1x128xf32>
      %c0_101 = arith.constant 0 : index
      %c0_102 = arith.constant 0 : index
      %231 = vector.load %arg21[%c0_101, %c0_102] : memref<1x128xf32, #tpu.memory_space<vmem>>, vector<1x128xf32>
      %232 = arith.addf %230, %231 : vector<1x128xf32>
      %233 = tpu.iota {dimensions = array<i32: 1>} : vector<1x128xi32>
      %c10_i32 = arith.constant 10 : i32
      %234 = vector.broadcast %c10_i32 : i32 to vector<1x128xi32>
      %235 = arith.cmpi slt, %233, %234 : vector<1x128xi32>
      %cst_103 = arith.constant -1.000000e+30 : f32
      %236 = vector.broadcast %cst_103 : f32 to vector<1x128xf32>
      %237 = arith.select %235, %232, %236 : vector<1x128xi1>, vector<1x128xf32>
      %cst_104 = arith.constant dense<0xFF800000> : vector<1xf32>
      %238 = vector.multi_reduction <maximumf>, %237, %cst_104 [1] : vector<1x128xf32> to vector<1xf32>
      %239 = vector.shape_cast %238 : vector<1xf32> to vector<1x1xf32>
      %240 = vector.broadcast %239 : vector<1x1xf32> to vector<1x128xf32>
      %241 = arith.subf %237, %240 : vector<1x128xf32>
      %242 = math.exp %241 : vector<1x128xf32>
      %cst_105 = arith.constant dense<0.000000e+00> : vector<1xf32>
      %243 = vector.multi_reduction <add>, %242, %cst_105 [1] : vector<1x128xf32> to vector<1xf32>
      %244 = vector.shape_cast %243 : vector<1xf32> to vector<1x1xf32>
      %245 = tpu.reciprocal %244 {approx = true} : vector<1x1xf32> -> vector<1x1xf32>
      %246 = vector.broadcast %245 : vector<1x1xf32> to vector<1x128xf32>
      %247 = arith.mulf %242, %246 : vector<1x128xf32>
      %c0_106 = arith.constant 0 : index
      %c0_107 = arith.constant 0 : index
      %c0_108 = arith.constant 0 : index
      %248 = vector.load %arg22[%c0_106, %c0_107, %c0_108] : memref<1x1x128xf32, #tpu.memory_space<vmem>>, vector<1x1x128xf32>
      %249 = vector.shape_cast %248 : vector<1x1x128xf32> to vector<1x128xf32>
      %250 = vector.shape_cast %247 : vector<1x128xf32> to vector<1x1x128xf32>
      tpu.vector_store %arg22[%c0_106, %c0_107, %c0_108], %250 {strides = array<i32>} : memref<1x1x128xf32, #tpu.memory_space<vmem>>, vector<1x1x128xf32>,
    } else {
    }
    return
  }
  func.func @transform_0(%arg0: i32, %arg1: i32) -> (i32, i32, i32) {
    %c0_i32 = arith.constant 0 : i32
    %c0_i32_0 = arith.constant 0 : i32
    %c0_i32_1 = arith.constant 0 : i32
    return %arg0, %c0_i32, %c0_i32_0 : i32, i32, i32
  }
  func.func @transform_1(%arg0: i32, %arg1: i32) -> (i32, i32, i32) {
    %c0_i32 = arith.constant 0 : i32
    %c0_i32_0 = arith.constant 0 : i32
    %c0_i32_1 = arith.constant 0 : i32
    return %arg0, %c0_i32, %c0_i32_0 : i32, i32, i32
  }
  func.func @transform_2(%arg0: i32, %arg1: i32) -> (i32, i32, i32) {
    %c0_i32 = arith.constant 0 : i32
    %c0_i32_0 = arith.constant 0 : i32
    %c0_i32_1 = arith.constant 0 : i32
    return %arg1, %c0_i32, %c0_i32_0 : i32, i32, i32
  }
  func.func @transform_3(%arg0: i32, %arg1: i32) -> (i32, i32, i32) {
    %c0_i32 = arith.constant 0 : i32
    %c0_i32_0 = arith.constant 0 : i32
    %c0_i32_1 = arith.constant 0 : i32
    return %arg1, %c0_i32, %c0_i32_0 : i32, i32, i32
  }
  func.func @transform_4(%arg0: i32, %arg1: i32) -> (i32, i32, i32) {
    %c0_i32 = arith.constant 0 : i32
    %c0_i32_0 = arith.constant 0 : i32
    %c0_i32_1 = arith.constant 0 : i32
    return %arg1, %c0_i32, %c0_i32_0 : i32, i32, i32
  }
  func.func @transform_5(%arg0: i32, %arg1: i32) -> (i32, i32, i32) {
    %c0_i32 = arith.constant 0 : i32
    %c0_i32_0 = arith.constant 0 : i32
    %c0_i32_1 = arith.constant 0 : i32
    return %arg1, %c0_i32, %c0_i32_0 : i32, i32, i32
  }
  func.func @transform_6(%arg0: i32, %arg1: i32) -> (i32, i32, i32) {
    %c0_i32 = arith.constant 0 : i32
    %c0_i32_0 = arith.constant 0 : i32
    %c0_i32_1 = arith.constant 0 : i32
    return %arg1, %c0_i32, %c0_i32_0 : i32, i32, i32
  }
  func.func @transform_7(%arg0: i32, %arg1: i32) -> (i32, i32, i32) {
    %c0_i32 = arith.constant 0 : i32
    %c0_i32_0 = arith.constant 0 : i32
    %c0_i32_1 = arith.constant 0 : i32
    return %arg1, %c0_i32, %c0_i32_0 : i32, i32, i32
  }
  func.func @transform_8(%arg0: i32, %arg1: i32) -> (i32, i32, i32) {
    %c0_i32 = arith.constant 0 : i32
    %c0_i32_0 = arith.constant 0 : i32
    %c0_i32_1 = arith.constant 0 : i32
    return %arg1, %c0_i32, %c0_i32_0 : i32, i32, i32
  }
  func.func @transform_9(%arg0: i32, %arg1: i32) -> (i32, i32, i32) {
    %c0_i32 = arith.constant 0 : i32
    %c0_i32_0 = arith.constant 0 : i32
    %c0_i32_1 = arith.constant 0 : i32
    return %arg1, %c0_i32, %c0_i32_0 : i32, i32, i32
  }
  func.func @transform_10(%arg0: i32, %arg1: i32) -> (i32, i32, i32) {
    %c0_i32 = arith.constant 0 : i32
    %c0_i32_0 = arith.constant 0 : i32
    %c0_i32_1 = arith.constant 0 : i32
    return %arg1, %c0_i32, %c0_i32_0 : i32, i32, i32
  }
  func.func @transform_11(%arg0: i32, %arg1: i32) -> (i32, i32, i32) {
    %c0_i32 = arith.constant 0 : i32
    %c0_i32_0 = arith.constant 0 : i32
    %c0_i32_1 = arith.constant 0 : i32
    return %arg1, %c0_i32, %c0_i32_0 : i32, i32, i32
  }
  func.func @transform_12(%arg0: i32, %arg1: i32) -> (i32, i32, i32) {
    %c0_i32 = arith.constant 0 : i32
    %c0_i32_0 = arith.constant 0 : i32
    %c0_i32_1 = arith.constant 0 : i32
    return %arg1, %c0_i32, %c0_i32_0 : i32, i32, i32
  }
  func.func @transform_13(%arg0: i32, %arg1: i32) -> (i32, i32, i32) {
    %c0_i32 = arith.constant 0 : i32
    %c0_i32_0 = arith.constant 0 : i32
    %c0_i32_1 = arith.constant 0 : i32
    return %arg1, %c0_i32, %c0_i32_0 : i32, i32, i32
  }
  func.func @transform_14(%arg0: i32, %arg1: i32) -> (i32, i32, i32) {
    %c0_i32 = arith.constant 0 : i32
    %c0_i32_0 = arith.constant 0 : i32
    %c0_i32_1 = arith.constant 0 : i32
    return %arg1, %c0_i32, %c0_i32_0 : i32, i32, i32
  }
  func.func @transform_15(%arg0: i32, %arg1: i32) -> (i32, i32, i32) {
    %c0_i32 = arith.constant 0 : i32
    %c0_i32_0 = arith.constant 0 : i32
    %c0_i32_1 = arith.constant 0 : i32
    return %arg1, %c0_i32, %c0_i32_0 : i32, i32, i32
  }
  func.func @transform_16(%arg0: i32, %arg1: i32) -> (i32, i32, i32) {
    %c0_i32 = arith.constant 0 : i32
    %c0_i32_0 = arith.constant 0 : i32
    %c0_i32_1 = arith.constant 0 : i32
    return %arg1, %c0_i32, %c0_i32_0 : i32, i32, i32
  }
  func.func @transform_17(%arg0: i32, %arg1: i32) -> (i32, i32, i32) {
    %c0_i32 = arith.constant 0 : i32
    %c0_i32_0 = arith.constant 0 : i32
    %c0_i32_1 = arith.constant 0 : i32
    return %arg1, %c0_i32, %c0_i32_0 : i32, i32, i32
  }
  func.func @transform_18(%arg0: i32, %arg1: i32) -> (i32, i32) {
    %c0_i32 = arith.constant 0 : i32
    %c0_i32_0 = arith.constant 0 : i32
    %c0_i32_1 = arith.constant 0 : i32
    return %c0_i32, %c0_i32_0 : i32, i32
  }
  func.func @transform_19(%arg0: i32, %arg1: i32) -> (i32, i32) {
    %c0_i32 = arith.constant 0 : i32
    %c0_i32_0 = arith.constant 0 : i32
    %c0_i32_1 = arith.constant 0 : i32
    return %c0_i32, %c0_i32_0 : i32, i32
  }
  func.func @transform_20(%arg0: i32, %arg1: i32) -> (i32, i32, i32) {
    %c0_i32 = arith.constant 0 : i32
    %c0_i32_0 = arith.constant 0 : i32
    %c0_i32_1 = arith.constant 0 : i32
    return %arg0, %c0_i32, %c0_i32_0 : i32, i32, i32
  }
}

</mosaic_0001>

<bundles_post_ra>
// kernel: bert_classifier_forward.1
= control target key start
LH: loop header
LB: loop body
LE: loop exit
PB: predicated region body
PF: predicated region fallthrough
CT: control target
= control target key end

     0   :  { %s4508_s0 = inlined_call_operand.hbm [shape: f32[2,8,32], index: 0, kind: input, shape index: {}]   ;;  %s4509_s1 = inlined_call_operand.hbm [shape: f32[2,1,8], index: 1, kind: input, shape index: {}]   ;;  %s4510_s2 = inlined_call_operand.vmem [shape: bf16[2,32,32], index: 2, kind: input, shape index: {}]   ;;  %s4511_s3 = inlined_call_operand.hbm [shape: f32[2,1,32], index: 3, kind: input, shape index: {}]   ;;  %s4512_s4 = inlined_call_operand.vmem [shape: bf16[2,32,32], index: 4, kind: input, shape index: {}]   ;;  %s4513_s5 = inlined_call_operand.hbm [shape: f32[2,1,32], index: 5, kind: input, shape index: {}]   ;;  %s4514_s6 = inlined_call_operand.vmem [shape: bf16[2,32,32], index: 6, kind: input, shape index: {}]   ;;  %s4515_s7 = inlined_call_operand.hbm [shape: f32[2,1,32], index: 7, kind: input, shape index: {}]   ;;  %s4516_s8 = inlined_call_operand.hbm [shape: bf16[2,32,32], index: 8, kind: input, shape index: {}]   ;;  %s4517_s9 = inlined_call_operand.hbm [shape: f32[2,1,32], index: 9, kind: input, shape index: {}]   ;;  %s4518_s10 = inlined_call_operand.hbm [shape: f32[2,1,32], index: 10, kind: input, shape index: {}]   ;;  %s4519_s11 = inlined_call_operand.hbm [shape: f32[2,1,32], index: 11, kind: input, shape index: {}]   ;;  %s4520_s12 = inlined_call_operand.hbm [shape: bf16[2,32,64], index: 12, kind: input, shape index: {}]   ;;  %s4521_s13 = inlined_call_operand.hbm [shape: f32[2,1,64], index: 13, kind: input, shape index: {}]   ;;  %s4522_s14 = inlined_call_operand.vmem [shape: bf16[2,64,32], index: 14, kind: input, shape index: {}]   ;;  %s4523_s15 = inlined_call_operand.hbm [shape: f32[2,1,32], index: 15, kind: input, shape index: {}]   ;;  %s4524_s16 = inlined_call_operand.hbm [shape: f32[2,1,32], index: 16, kind: input, shape index: {}]   ;;  %s4525_s17 = inlined_call_operand.hbm [shape: f32[2,1,32], index: 17, kind: input, shape index: {}]   ;;  %s4526_s18 = inlined_call_operand.vmem [shape: f32[32,128], index: 18, kind: input, shape index: {}]   ;;  %s4527_s19 = inlined_call_operand.vmem [shape: f32[1,128], index: 19, kind: input, shape index: {}]   ;;  %s4528_s20 = inlined_call_operand.hbm [shape: f32[2,1,128], index: 20, kind: output, shape index: {}]  }
   0x1   :  { %4561 = sst [smem:[#allocation53_spill]] %s4508_s0 }
   0x2   :  { %4562 = sst [smem:[#allocation54_spill]] %s4509_s1 }
   0x3   :  { %4563 = sst [smem:[#allocation55_spill]] %s4510_s2 }
   0x4   :  { %4564 = sst [smem:[#allocation56_spill]] %s4511_s3 }
   0x5   :  { %4565 = sst [smem:[#allocation57_spill]] %s4512_s4 }
   0x6   :  { %4566 = sst [smem:[#allocation58_spill]] %s4513_s5 }
   0x7   :  { %4567 = sst [smem:[#allocation59_spill]] %s4514_s6 }
   0x8   :  { %4568 = sst [smem:[#allocation60_spill]] %s4515_s7 }
   0x9   :  { %4569 = sst [smem:[#allocation61_spill]] %s4516_s8 }
   0xa   :  { %4570 = sst [smem:[#allocation62_spill]] %s4517_s9 }
   0xb   :  { %4571 = sst [smem:[#allocation63_spill]] %s4518_s10 }
   0xc   :  { %4572 = sst [smem:[#allocation64_spill]] %s4519_s11 }
   0xd   :  { %4573 = sst [smem:[#allocation65_spill]] %s4520_s12 }
   0xe   :  { %4574 = sst [smem:[#allocation66_spill]] %s4521_s13 }
   0xf   :  { %4575 = sst [smem:[#allocation67_spill]] %s4522_s14 }
  0x10   :  { %4576 = sst [smem:[#allocation68_spill]] %s4524_s16 }
  0x11   :  { %4577 = sst [smem:[#allocation69_spill]] %s4525_s17 }
  0x12   :  { %4578 = sst [smem:[#allocation70_spill]] %s4526_s18 }
  0x13   :  { %4579 = sst [smem:[#allocation71_spill]] %s4527_s19 }
  0x14   :  { %4580 = sst [smem:[#allocation72_spill]] %s4528_s20 }
  0x15   :  { %25 = vsyncpa [#allocation4], 0 }
  0x16   :  { %27 = vsyncpa [#allocation4 + $0x1], 0 }
  0x17   :  { %28 = vsyncpa [#allocation7], 0 }
  0x18   :  { %30 = vsyncpa [#allocation7 + $0x1], 0 }
  0x19   :  { %31 = vsyncpa [#allocation10], 0 }
  0x1a   :  { %33 = vsyncpa [#allocation10 + $0x1], 0 }
  0x1b   :  { %34 = vsyncpa [#allocation13], 0 }
  0x1c   :  { %36 = vsyncpa [#allocation13 + $0x1], 0 }
  0x1d   :  { %37 = vsyncpa [#allocation16], 0 }
  0x1e   :  { %39 = vsyncpa [#allocation16 + $0x1], 0 }
  0x1f   :  { %40 = vsyncpa [#allocation19], 0 }
  0x20   :  { %42 = vsyncpa [#allocation19 + $0x1], 0 }
  0x21   :  { %43 = vsyncpa [#allocation22], 0 }
  0x22   :  { %45 = vsyncpa [#allocation22 + $0x1], 0 }
  0x23   :  { %46 = vsyncpa [#allocation25], 0 }
  0x24   :  { %48 = vsyncpa [#allocation25 + $0x1], 0 }
  0x25   :  { %49 = vsyncpa [#allocation5], 0 }
  0x26   :  { %51 = vsyncpa [#allocation5 + $0x1], 0  ;;  %s3818_s1 = smov 0   ;;  %s3820_s22 = smov 0  }
  0x27   :  { %s3822_s23 = smov 0   ;;  %s3824_s24 = smov 0  }
  0x28   :  { %s3826_s2 = smov 0   ;;  %s3828_s25 = smov 0  }
  0x29   :  { %s3830_s3 = smov 0   ;;  %s3832_s26 = smov 0  }
  0x2a   :  { %s3834_s27 = smov 0   ;;  %s3836_s28 = smov 0  }
  0x2b   :  { %s3838_s4 = smov 0  }
  0x2c LB: > { %4581 = sst [smem:[#allocation37_spill]] %s3651_s22  ;;  %s3874_s29 = sadd.s32 4294967295, %s3687_s4   ;;  %s3687_s4 = sphi %s3838_s4, %s57_s4   ;;  %s3683_s28 = sphi %s3836_s28, %s4669_s28   ;;  %s3679_s27 = sphi %s3834_s27, %s4668_s27   ;;  %s3675_s26 = sphi %s3832_s26, %s4667_s26   ;;  %s3671_s3 = sphi %s3830_s3, %s4666_s3   ;;  %s3667_s25 = sphi %s3828_s25, %s4663_s25   ;;  %s3663_s2 = sphi %s3826_s2, %s4662_s2   ;;  %s3659_s24 = sphi %s3824_s24, %s4661_s24   ;;  %s3655_s23 = sphi %s3822_s23, %s4660_s23   ;;  %s3651_s22 = sphi %s3820_s22, %s4659_s22   ;;  %s3647_s1 = sphi %s3818_s1, %s4658_s1  }
  0x2d   : > { %4582 = sst [smem:[#allocation38_spill]] %s3655_s23  ;;  %s2742_s30 = sadd.s32 4294967294, %s3687_s4  }
  0x2e   : > { %4583 = sst [smem:[#allocation39_spill]] %s3659_s24  ;;  %s66_s0 = sadd.s32 1, %s3679_s27 }
  0x2f   : > { %4584 = sst [smem:[#allocation40_spill]] %s3663_s2  ;;  %s69_s21 = sadd.s32 1, %s3683_s28 }
  0x30   : > { %4585 = sst [smem:[#allocation41_spill]] %s3667_s25  ;;  %p67_p0 = scmp.ge.s32.totalorder %s66_s0, 2 }
  0x31   : > { %4586 = sst [smem:[#allocation42_spill]] %s3671_s3  ;;  %s76_s20 = sadd.s32 1, %s3667_s25 }
  0x32   : > { %4587 = sst [smem:[#allocation43_spill]] %s3675_s26  ;;  %p83_p1 = scmp.ne.s32.totalorder %s3667_s25, %s3663_s2 }
  0x33   : > { %4588 = sst [smem:[#allocation44_spill]] %s3874_s29  ;;  %p84_p2 = scmp.eq.s32.totalorder %s3687_s4, 0 }
  0x34   : > { %s4671_s0 = smov (%p67_p0, %s66_s0), 0  ;;  %s4673_s21 = smov (!%p67_p0, %s69_s21), %s3683_s28 }
  0x35   : > { %4589 = sst [smem:[#allocation45_spill]] %s4671_s0  ;;  %p3891_p3 = por %p84_p2, %p83_p1 }
  0x36   : > { %p4535_p4 = scmp.ne.s32.totalorder %s3663_s2, %s3659_s24  ;;  %p71_p5 = scmp.ge.s32.totalorder %s4673_s21, 2 }
  0x37   : > { %p90_p6 = scmp.eq.s32.totalorder %s3874_s29, 0  ;;  %s151_s19 = ssub.s32 %s3679_s27, %s4671_s0 }
  0x38   : > { %s154_s18 = sadd.s32 1, %s3655_s23  ;;  %s4675_s21 = smov (%p71_p5, %s4673_s21), 0 }
  0x39   : > { %4591 = sst [smem:[#allocation46_spill]] %s4675_s21  ;;  %p3908_p7 = por %p90_p6, %p4535_p4 }
  0x3a   : > { %p152_p8 = scmp.eq.s32.totalorder %s151_s19, 0  ;;  %s73_s6 = ssub.s32 %s3683_s28, %s4675_s21 }
  0x3b   : > { %s4592_s14 = scalar_select %p3908_p7, 1, 0 }
  0x3c   : > { %p161_p9 = scmp.ne.s32.totalorder %s3655_s23, %s3651_s22  ;;  %p74_p10 = scmp.eq.s32.totalorder %s73_s6, 0 }
  0x3d   : > { %4593 = sst [smem:[#allocation47_spill]] %s4592_s14  ;;  %p167_p11 = scmp.ne.s32.totalorder %s3651_s22, %s3647_s1 }
  0x3e   : > { %s3919_s3 = scalar_select %p152_p8, %s3655_s23, %s154_s18  }
  0x3f   : > { %s3922_s0 = scalar_select %p74_p10, %s3667_s25, %s76_s20  }
  0x40   : > { %4594 = sst [smem:[#allocation48_spill]] %s3919_s3  ;;  %p3926_p12 = por %p161_p9, %p84_p2 }
  0x41   : > { %4595 = sst [smem:[#allocation49_spill]] %s3922_s0  ;;  %p3932_p13 = por %p167_p11, %p90_p6 }
  0x42   : > { %p597_p0 = scmp.eq.s32.totalorder %s3874_s29, 3  ;;  %p603_p5 = scmp.eq.s32.totalorder %s2742_s30, 3 }
  0x43   : > { %s4597_s16 = scalar_select %p3932_p13, 1, 0 }
  0x44   : > { %p3940_p4 = por %p597_p0, %p83_p1  ;;  %p4601_p8 = scmp.ne.s32.totalorder %s3663_s2, %s3659_s24 }
  0x45   : > { %4598 = sst [smem:[#allocation50_spill]] %s4597_s16  ;;  %p2744_p2 = scmp.ge.s32.totalorder %s3687_s4, 4 }
  0x46   : > { %s4599_s6 = scalar_select %p3940_p4, 1, 0 }
  0x47   : > { %p3947_p10 = por %p603_p5, %p4601_p8  ;;  %625 = sbr.rel (%p2744_p2) target bundleno = 273 (0x111), region = 24 }
  0x48   : > { %4600 = sst [smem:[#allocation51_spill]] %s4599_s6  ;;  %s3953_s19 = sand.u32 (!%p2744_p2), 1, %s3667_s25  }
  0x49   : > { %s4602_s18 = scalar_select %p3947_p10, 1, 0 }
  0x4a   : > { %s3956_s20 = sand.u32 (!%p2744_p2), 1, %s3687_s4   ;;  %s2747_s1 = sshll.u32 (!%p2744_p2), %s3683_s28, 4 }
  0x4b   : > { %4603 = sst [smem:[#allocation52_spill]] %s4602_s18  ;;  %s650_s30 = scalar_lea.vmem (!%p2744_p2), [#allocation6], %s3953_s19 }
  0x4c   : > { %s657_s21 = sshll.u32 %s650_s30, 4  ;;  %s4604_s24 = sld [smem:[#allocation54_spill]]  ;;  %s658_s21 = int_to_ptr.vmem [resolvable:$true] %s657_s21 }
  0x4d   : > { %s4546_s6 = scalar_lea.sflag [#allocation7], %s3956_s20  ;;  %s3183_s16 = scalar_lea.vmem %s658_s21, 16 }
  0x4e   : > { %p3184_p1 = scmp.ne.s32.totalorder %s658_s21, %s3183_s16  ;;  %s3689_s25 = smov [#allocation6]  }
  0x4f   : > { %s3187_s22 = sshll.u32 %s3689_s25, 4  ;;  %s3188_s22 = int_to_ptr.vmem [resolvable:$false] %s3187_s22 }
  0x50   : > { %p3185_p6 = pnand %p3184_p1, %p3891_p3  ;;  %s3189_s29 = scalar_lea.vmem %s3188_s22, 32 }
  0x51   : > { %p3190_p11 = scmp.lt.s32.totalorder %s658_s21, %s3188_s22  ;;  %p3191_p0 = scmp.lt.s32.totalorder %s3189_s29, %s3183_s16 }
  0x52   : > { %s655_s18 = scalar_lea.hbm %s4604_s24, %s2747_s1  ;;  %p3186_p9 = pneg %p3185_p6 }
  0x53   : > { %p3192_p5 = por %p3191_p0, %p3190_p11 }
  0x55   : > { %p3193_p8 = pnand %p3192_p5, %p3186_p9 }
  0x57   : > { %3196 = shalt.err (!%p3193_p8)
}
  0x58   : > { %3002 = dma.hbm_to_vmem [thread:$0]  (%p3891_p3), %s655_s18, 16, %s658_s21, %s4546_s6  }
  0x59   : > { %s3971_s24 = sand.u32 1, %s3655_s23   ;;  %s3974_s25 = sshll.u32 %s3679_s27, 4 }
  0x5a   : > { %s4605_s5 = sld [smem:[#allocation58_spill]]  ;;  %s700_s29 = scalar_lea.vmem [#allocation9], %s3971_s24 }
  0x5b   : > { %s707_s0 = sshll.u32 %s700_s29, 4  ;;  %s4551_s1 = scalar_lea.sflag [#allocation10], %s3956_s20  ;;  %s708_s0 = int_to_ptr.vmem [resolvable:$true] %s707_s0 }
  0x5c   : > { %s3209_s30 = scalar_lea.vmem %s708_s0, 16  ;;  %s3690_s21 = smov [#allocation9]  }
  0x5d   : > { %p3210_p2 = scmp.ne.s32.totalorder %s708_s0, %s3209_s30  ;;  %s3213_s18 = sshll.u32 %s3690_s21, 4  ;;  %s3214_s18 = int_to_ptr.vmem [resolvable:$false] %s3213_s18 }
  0x5e   : > { %s3215_s6 = scalar_lea.vmem %s3214_s18, 32  ;;  %p3216_p9 = scmp.lt.s32.totalorder %s708_s0, %s3214_s18 }
  0x5f   : > { %p3211_p1 = pnand %p3210_p2, %p3926_p12  ;;  %p3217_p11 = scmp.lt.s32.totalorder %s3215_s6, %s3209_s30 }
  0x60   : > { %s705_s3 = scalar_lea.hbm %s4605_s5, %s3974_s25 }
  0x61   : > { %p3212_p6 = pneg %p3211_p1  ;;  %p3218_p0 = por %p3217_p11, %p3216_p9 }
  0x63   : > { %p3219_p5 = pnand %p3218_p0, %p3212_p6 }
  0x65   : > { %3222 = shalt.err (!%p3219_p5)
}
  0x66   : > { %3004 = dma.hbm_to_vmem [thread:$0]  (%p3926_p12), %s705_s3, 16, %s708_s0, %s4551_s1  }
  0x67   : > { %s4552_s22 = sshll.u32 %s3971_s24, 4  ;;  %s4553_s16 = sshll.u32 %s3679_s27, 8 }
  0x68   : > { %s4606_s8 = sld [smem:[#allocation61_spill]]  ;;  %s743_s30 = scalar_lea.vmem [#allocation12], %s4552_s22 }
  0x69   : > { %s750_s18 = sshll.u32 %s743_s30, 4  ;;  %s4554_s5 = scalar_lea.sflag [#allocation13], %s3956_s20  ;;  %s751_s18 = int_to_ptr.vmem [resolvable:$true] %s750_s18 }
  0x6a   : > { %s3235_s23 = scalar_lea.vmem %s751_s18, 256  ;;  %s3691_s14 = smov [#allocation12]  }
  0x6b   : > { %p3236_p8 = scmp.ne.s32.totalorder %s751_s18, %s3235_s23  ;;  %s3239_s2 = sshll.u32 %s3691_s14, 4  ;;  %s3240_s2 = int_to_ptr.vmem [resolvable:$false] %s3239_s2 }
  0x6c   : > { %s3241_s3 = scalar_lea.vmem %s3240_s2, 512  ;;  %p3242_p6 = scmp.lt.s32.totalorder %s751_s18, %s3240_s2 }
  0x6d   : > { %p3237_p2 = pnand %p3236_p8, %p3926_p12  ;;  %p3243_p9 = scmp.lt.s32.totalorder %s3241_s3, %s3235_s23 }
  0x6e   : > { %s749_s6 = scalar_lea.hbm %s4606_s8, %s4553_s16 }
  0x6f   : > { %p3238_p1 = pneg %p3237_p2  ;;  %p3244_p11 = por %p3243_p9, %p3242_p6 }
  0x71   : > { %p3245_p0 = pnand %p3244_p11, %p3238_p1 }
  0x73   : > { %3248 = shalt.err (!%p3245_p0)
}
  0x74   : > { %s4555_s0 = smov 64   ;;  %s4556_s29 = smov 4  }
  0x75   : > { %3006 = dma.hbm_to_vmem [thread:$0]  (%p3926_p12), %s749_s6, 256, %s751_s18, %s4554_s5, %s4555_s0, %s4555_s0, %s4556_s29  }
  0x76   : > { %s4607_s10 = sld [smem:[#allocation63_spill]]  ;;  %s780_s21 = scalar_lea.vmem [#allocation15], %s3971_s24 }
  0x77   : > { %s787_s30 = sshll.u32 %s780_s21, 4  ;;  %s4557_s3 = scalar_lea.sflag [#allocation16], %s3956_s20  ;;  %s788_s30 = int_to_ptr.vmem [resolvable:$true] %s787_s30 }
  0x78   : > { %s3261_s1 = scalar_lea.vmem %s788_s30, 16  ;;  %s3694_s22 = smov [#allocation15]  }
  0x79   : > { %p3262_p5 = scmp.ne.s32.totalorder %s788_s30, %s3261_s1  ;;  %s3265_s16 = sshll.u32 %s3694_s22, 4  ;;  %s3266_s16 = int_to_ptr.vmem [resolvable:$false] %s3265_s16 }
  0x7a   : > { %s3267_s8 = scalar_lea.vmem %s3266_s16, 32  ;;  %p3268_p1 = scmp.lt.s32.totalorder %s788_s30, %s3266_s16 }
  0x7b   : > { %p3263_p8 = pnand %p3262_p5, %p3926_p12  ;;  %p3269_p6 = scmp.lt.s32.totalorder %s3267_s8, %s3261_s1 }
  0x7c   : > { %s785_s23 = scalar_lea.hbm %s4607_s10, %s3974_s25 }
  0x7d   : > { %p3264_p2 = pneg %p3263_p8  ;;  %p3270_p9 = por %p3269_p6, %p3268_p1 }
  0x7f   : > { %p3271_p11 = pnand %p3270_p9, %p3264_p2 }
  0x81   : > { %3274 = shalt.err (!%p3271_p11)
}
  0x82   : > { %3008 = dma.hbm_to_vmem [thread:$0]  (%p3926_p12), %s785_s23, 16, %s788_s30, %s4557_s3  }
  0x83   : > { %s4608_s6 = sshll.u32 %s3679_s27, 8  ;;  %s4609_s12 = sld [smem:[#allocation65_spill]] }
  0x84   : > { %s4610_s2 = sshll.u32 %s3971_s24, 4  ;;  %s4558_s1 = scalar_lea.sflag [#allocation19], %s3956_s20 }
  0x85   : > { %s815_s16 = scalar_lea.vmem [#allocation18], %s4610_s2  ;;  %s3695_s5 = smov [#allocation18]  }
  0x86   : > { %s822_s8 = sshll.u32 %s815_s16, 4  ;;  %s3291_s0 = sshll.u32 %s3695_s5, 4  ;;  %s823_s8 = int_to_ptr.vmem [resolvable:$true] %s822_s8  ;;  %s3292_s0 = int_to_ptr.vmem [resolvable:$false] %s3291_s0 }
  0x87   : > { %s3287_s21 = scalar_lea.vmem %s823_s8, 256  ;;  %s3293_s29 = scalar_lea.vmem %s3292_s0, 512 }
  0x88   : > { %p3288_p0 = scmp.ne.s32.totalorder %s823_s8, %s3287_s21  ;;  %p3294_p2 = scmp.lt.s32.totalorder %s823_s8, %s3292_s0 }
  0x89   : > { %s821_s22 = scalar_lea.hbm %s4609_s12, %s4608_s6  ;;  %p3295_p1 = scmp.lt.s32.totalorder %s3293_s29, %s3287_s21 }
  0x8a   : > { %p3289_p5 = pnand %p3288_p0, %p3926_p12 }
  0x8b   : > { %p3296_p6 = por %p3295_p1, %p3294_p2 }
  0x8c   : > { %p3290_p8 = pneg %p3289_p5 }
  0x8e   : > { %p3297_p9 = pnand %p3296_p6, %p3290_p8 }
  0x90   : > { %3300 = shalt.err (!%p3297_p9)
}
  0x91   : > { %s4611_s23 = smov 4   ;;  %s4612_s30 = smov 64  }
  0x92   : > { %3010 = dma.hbm_to_vmem [thread:$0]  (%p3926_p12), %s821_s22, 256, %s823_s8, %s4558_s1, %s4612_s30, %s4612_s30, %s4611_s23  }
  0x93   : > { %s865_s0 = scalar_lea.hbm %s4523_s15, %s3974_s25  ;;  %s860_s29 = scalar_lea.vmem [#allocation21], %s3971_s24 }
  0x94   : > { %s867_s18 = sshll.u32 %s860_s29, 4  ;;  %s4559_s14 = scalar_lea.sflag [#allocation22], %s3956_s20  ;;  %s868_s18 = int_to_ptr.vmem [resolvable:$true] %s867_s18 }
  0x95   : > { %s3313_s2 = scalar_lea.vmem %s868_s18, 16  ;;  %s3696_s16 = smov [#allocation21]  }
  0x96   : > { %p3314_p11 = scmp.ne.s32.totalorder %s868_s18, %s3313_s2  ;;  %s3317_s21 = sshll.u32 %s3696_s16, 4  ;;  %s3318_s21 = int_to_ptr.vmem [resolvable:$false] %s3317_s21 }
  0x97   : > { %s3319_s3 = scalar_lea.vmem %s3318_s21, 32  ;;  %p3320_p8 = scmp.lt.s32.totalorder %s868_s18, %s3318_s21 }
  0x98   : > { %p3315_p0 = pnand %p3314_p11, %p3926_p12  ;;  %p3321_p2 = scmp.lt.s32.totalorder %s3319_s3, %s3313_s2 }
  0x9a   : > { %p3316_p5 = pneg %p3315_p0  ;;  %p3322_p1 = por %p3321_p2, %p3320_p8 }
  0x9c   : > { %p3323_p6 = pnand %p3322_p1, %p3316_p5 }
  0x9e   : > { %3326 = shalt.err (!%p3323_p6)
}
  0x9f   : > { %3012 = dma.hbm_to_vmem [thread:$0]  (%p3926_p12), %s865_s0, 16, %s868_s18, %s4559_s14  }
  0xa0   : > { %s2745_s22 = sshll.u32 %s3953_s19, 3  ;;  %s2746_s8 = sshll.u32 %s3683_s28, 7 }
  0xa1   : > { %s4613_s5 = sld [smem:[#allocation53_spill]]  ;;  %s633_s3 = scalar_lea.vmem [#allocation3], %s2745_s22 }
  0xa2   : > { %s640_s29 = sshll.u32 %s633_s3, 4  ;;  %s4614_s21 = sld [smem:[#allocation56_spill]]  ;;  %s641_s29 = int_to_ptr.vmem [resolvable:$true] %s640_s29 }
  0xa3   : > { %s630_s10 = scalar_lea.sflag [#allocation4], %s3953_s19  ;;  %s3339_s12 = scalar_lea.vmem %s641_s29, 128 }
  0xa4   : > { %p3340_p9 = scmp.ne.s32.totalorder %s641_s29, %s3339_s12  ;;  %s3697_s0 = smov [#allocation3]  }
  0xa5   : > { %s3343_s18 = sshll.u32 %s3697_s0, 4  ;;  %s3344_s18 = int_to_ptr.vmem [resolvable:$false] %s3343_s18 }
  0xa6   : > { %p3341_p11 = pnand %p3340_p9, %p3891_p3  ;;  %s3345_s14 = scalar_lea.vmem %s3344_s18, 256 }
  0xa7   : > { %s638_s6 = scalar_lea.hbm %s4613_s5, %s2746_s8  ;;  %p3346_p5 = scmp.lt.s32.totalorder %s641_s29, %s3344_s18 }
  0xa8   : > { %s680_s1 = scalar_lea.hbm %s4614_s21, %s3974_s25  ;;  %p3342_p0 = pneg %p3341_p11 }
  0xa9   : > { %p3347_p8 = scmp.lt.s32.totalorder %s3345_s14, %s3339_s12 }
  0xab   : > { %p3348_p2 = por %p3347_p8, %p3346_p5 }
  0xad   : > { %p3349_p1 = pnand %p3348_p2, %p3342_p0 }
  0xaf   : > { %3352 = shalt.err (!%p3349_p1)
}
  0xb0   : > { %3001 = dma.hbm_to_vmem [thread:$0]  (%p3891_p3), %s638_s6, 128, %s641_s29, %s630_s10  }
  0xb1   : > { %s675_s19 = scalar_lea.vmem [#allocation8], %s3971_s24  ;;  %s4615_s7 = sld [smem:[#allocation60_spill]] }
  0xb2   : > { %s682_s22 = sshll.u32 %s675_s19, 4  ;;  %s3698_s12 = smov [#allocation8]   ;;  %s683_s22 = int_to_ptr.vmem [resolvable:$true] %s682_s22 }
  0xb3   : > { %s3365_s5 = scalar_lea.vmem %s683_s22, 16  ;;  %s3369_s14 = sshll.u32 %s3698_s12, 4  ;;  %s3370_s14 = int_to_ptr.vmem [resolvable:$false] %s3369_s14 }
  0xb4   : > { %p3366_p6 = scmp.ne.s32.totalorder %s683_s22, %s3365_s5  ;;  %s3371_s26 = scalar_lea.vmem %s3370_s14, 32 }
  0xb5   : > { %p3372_p0 = scmp.lt.s32.totalorder %s683_s22, %s3370_s14  ;;  %p3373_p5 = scmp.lt.s32.totalorder %s3371_s26, %s3365_s5 }
  0xb6   : > { %p3367_p9 = pnand %p3366_p6, %p3926_p12 }
  0xb7   : > { %s730_s30 = scalar_lea.hbm %s4615_s7, %s3974_s25  ;;  %p3374_p8 = por %p3373_p5, %p3372_p0 }
  0xb8   : > { %p3368_p11 = pneg %p3367_p9 }
  0xba   : > { %p3375_p3 = pnand %p3374_p8, %p3368_p11 }
  0xbc   : > { %3378 = shalt.err (!%p3375_p3)
}
  0xbd   : > { %s4616_s10 = scalar_lea.sflag [#allocation7], %s3956_s20  ;;  %s725_s29 = scalar_lea.vmem [#allocation11], %s3971_s24 }
  0xbe   : > { %3003 = dma.hbm_to_vmem [thread:$0]  (%p3926_p12), %s680_s1, 16, %s683_s22, %s4616_s10  }
  0xbf   : > { %s732_s2 = sshll.u32 %s725_s29, 4  ;;  %s4617_s9 = sld [smem:[#allocation62_spill]]  ;;  %s733_s2 = int_to_ptr.vmem [resolvable:$true] %s732_s2 }
  0xc0   : > { %s3391_s19 = scalar_lea.vmem %s733_s2, 16  ;;  %s3699_s8 = smov [#allocation11]  }
  0xc1   : > { %p3392_p2 = scmp.ne.s32.totalorder %s733_s2, %s3391_s19  ;;  %s3395_s23 = sshll.u32 %s3699_s8, 4  ;;  %s3396_s23 = int_to_ptr.vmem [resolvable:$false] %s3395_s23 }
  0xc2   : > { %s3397_s5 = scalar_lea.vmem %s3396_s23, 32  ;;  %p3398_p9 = scmp.lt.s32.totalorder %s733_s2, %s3396_s23 }
  0xc3   : > { %p3393_p1 = pnand %p3392_p2, %p3926_p12  ;;  %p3399_p11 = scmp.lt.s32.totalorder %s3397_s5, %s3391_s19 }
  0xc5   : > { %s768_s18 = scalar_lea.hbm %s4617_s9, %s3974_s25  ;;  %p3394_p6 = pneg %p3393_p1 }
  0xc6   : > { %p3400_p0 = por %p3399_p11, %p3398_p9 }
  0xc8   : > { %p3401_p5 = pnand %p3400_p0, %p3394_p6 }
  0xca   : > { %3404 = shalt.err (!%p3401_p5)
}
  0xcb   : > { %s4618_s1 = scalar_lea.sflag [#allocation10], %s3956_s20  ;;  %s763_s14 = scalar_lea.vmem [#allocation14], %s3971_s24 }
  0xcc   : > { %3005 = dma.hbm_to_vmem [thread:$0]  (%p3926_p12), %s730_s30, 16, %s733_s2, %s4618_s1  }
  0xcd   : > { %s770_s26 = sshll.u32 %s763_s14, 4  ;;  %s4619_s11 = sld [smem:[#allocation64_spill]]  ;;  %s771_s26 = int_to_ptr.vmem [resolvable:$true] %s770_s26 }
  0xce   : > { %s3417_s29 = scalar_lea.vmem %s771_s26, 16  ;;  %s3700_s16 = smov [#allocation14]  }
  0xcf   : > { %p3418_p8 = scmp.ne.s32.totalorder %s771_s26, %s3417_s29  ;;  %s3421_s0 = sshll.u32 %s3700_s16, 4  ;;  %s3422_s0 = int_to_ptr.vmem [resolvable:$false] %s3421_s0 }
  0xd0   : > { %s3423_s19 = scalar_lea.vmem %s3422_s0, 32  ;;  %p3424_p1 = scmp.lt.s32.totalorder %s771_s26, %s3422_s0 }
  0xd1   : > { %p3419_p3 = pnand %p3418_p8, %p3926_p12  ;;  %p3425_p6 = scmp.lt.s32.totalorder %s3423_s19, %s3417_s29 }
  0xd3   : > { %s802_s3 = scalar_lea.hbm %s4619_s11, %s3974_s25  ;;  %p3420_p2 = pneg %p3419_p3 }
  0xd4   : > { %p3426_p9 = por %p3425_p6, %p3424_p1 }
  0xd6   : > { %p3427_p11 = pnand %p3426_p9, %p3420_p2 }
  0xd8   : > { %3430 = shalt.err (!%p3427_p11)
}
  0xd9   : > { %s4620_s30 = scalar_lea.sflag [#allocation13], %s3956_s20  ;;  %s797_s23 = scalar_lea.vmem [#allocation17], %s3971_s24 }
  0xda   : > { %3007 = dma.hbm_to_vmem [thread:$0]  (%p3926_p12), %s768_s18, 16, %s771_s26, %s4620_s30  }
  0xdb   : > { %s804_s5 = sshll.u32 %s797_s23, 4  ;;  %s4621_s13 = sld [smem:[#allocation66_spill]]  ;;  %s805_s5 = int_to_ptr.vmem [resolvable:$true] %s804_s5 }
  0xdc   : > { %s3443_s14 = scalar_lea.vmem %s805_s5, 16  ;;  %s3701_s10 = smov [#allocation17]  }
  0xdd   : > { %p3444_p0 = scmp.ne.s32.totalorder %s805_s5, %s3443_s14  ;;  %s3447_s6 = sshll.u32 %s3701_s10, 4  ;;  %s3448_s6 = int_to_ptr.vmem [resolvable:$false] %s3447_s6 }
  0xde   : > { %s3449_s29 = scalar_lea.vmem %s3448_s6, 32  ;;  %p3450_p3 = scmp.lt.s32.totalorder %s805_s5, %s3448_s6 }
  0xdf   : > { %p3445_p5 = pnand %p3444_p0, %p3926_p12  ;;  %p3451_p2 = scmp.lt.s32.totalorder %s3449_s29, %s3443_s14 }
  0xe1   : > { %s840_s12 = scalar_lea.hbm %s4621_s13, %s3974_s25  ;;  %p3446_p8 = pneg %p3445_p5 }
  0xe2   : > { %p3452_p1 = por %p3451_p2, %p3450_p3 }
  0xe4   : > { %p3453_p6 = pnand %p3452_p1, %p3446_p8 }
  0xe6   : > { %3456 = shalt.err (!%p3453_p6)
}
  0xe7   : > { %s4622_s18 = scalar_lea.sflag [#allocation16], %s3956_s20  ;;  %s835_s0 = scalar_lea.vmem [#allocation20], %s3971_s24 }
  0xe8   : > { %3009 = dma.hbm_to_vmem [thread:$0]  (%p3926_p12), %s802_s3, 16, %s805_s5, %s4622_s18  }
  0xe9   : > { %s842_s19 = sshll.u32 %s835_s0, 4  ;;  %s4623_s8 = sld [smem:[#allocation68_spill]]  ;;  %s843_s19 = int_to_ptr.vmem [resolvable:$true] %s842_s19 }
  0xea   : > { %s3469_s1 = scalar_lea.vmem %s843_s19, 16  ;;  %s3702_s22 = smov [#allocation20]  }
  0xeb   : > { %p3470_p9 = scmp.ne.s32.totalorder %s843_s19, %s3469_s1  ;;  %s3473_s14 = sshll.u32 %s3702_s22, 4  ;;  %s3474_s14 = int_to_ptr.vmem [resolvable:$false] %s3473_s14 }
  0xec   : > { %s3475_s10 = scalar_lea.vmem %s3474_s14, 32  ;;  %p3476_p5 = scmp.lt.s32.totalorder %s843_s19, %s3474_s14 }
  0xed   : > { %p3471_p11 = pnand %p3470_p9, %p3926_p12  ;;  %p3477_p8 = scmp.lt.s32.totalorder %s3475_s10, %s3469_s1 }
  0xef   : > { %s882_s23 = scalar_lea.hbm %s4623_s8, %s3974_s25  ;;  %p3472_p0 = pneg %p3471_p11 }
  0xf0   : > { %p3478_p3 = por %p3477_p8, %p3476_p5 }
  0xf2   : > { %p3479_p2 = pnand %p3478_p3, %p3472_p0 }
  0xf4   : > { %3482 = shalt.err (!%p3479_p2)
}
  0xf5   : > { %s4624_s3 = scalar_lea.sflag [#allocation19], %s3956_s20  ;;  %s877_s29 = scalar_lea.vmem [#allocation23], %s3971_s24 }
  0xf6   : > { %3011 = dma.hbm_to_vmem [thread:$0]  (%p3926_p12), %s840_s12, 16, %s843_s19, %s4624_s3  }
  0xf7   : > { %s884_s18 = sshll.u32 %s877_s29, 4  ;;  %s3703_s16 = smov [#allocation23]   ;;  %s885_s18 = int_to_ptr.vmem [resolvable:$true] %s884_s18 }
  0xf8   : > { %s3495_s26 = scalar_lea.vmem %s885_s18, 16  ;;  %s3499_s0 = sshll.u32 %s3703_s16, 4  ;;  %s3500_s0 = int_to_ptr.vmem [resolvable:$false] %s3499_s0 }
  0xf9   : > { %p3496_p1 = scmp.ne.s32.totalorder %s885_s18, %s3495_s26  ;;  %s3501_s30 = scalar_lea.vmem %s3500_s0, 32 }
  0xfa   : > { %p3502_p11 = scmp.lt.s32.totalorder %s885_s18, %s3500_s0  ;;  %p3503_p0 = scmp.lt.s32.totalorder %s3501_s30, %s3495_s26 }
  0xfb   : > { %p3497_p6 = pnand %p3496_p1, %p3926_p12 }
  0xfc   : > { %p3504_p5 = por %p3503_p0, %p3502_p11 }
  0xfd   : > { %p3498_p9 = pneg %p3497_p6 }
  0xff   : > { %p3505_p8 = pnand %p3504_p5, %p3498_p9 }
 0x101   : > { %3508 = shalt.err (!%p3505_p8)
}
 0x102   : > { %s4625_s12 = scalar_lea.sflag [#allocation22], %s3956_s20  ;;  %s4626_s14 = sld [smem:[#allocation69_spill]] }
 0x103   : > { %3013 = dma.hbm_to_vmem [thread:$0]  (%p3926_p12), %s882_s23, 16, %s885_s18, %s4625_s12  }
 0x104   : > { %s894_s3 = scalar_lea.vmem [#allocation24], %s3971_s24  ;;  %s892_s6 = scalar_lea.sflag [#allocation25], %s3971_s24 }
 0x105   : > { %s901_s5 = sshll.u32 %s894_s3, 4  ;;  %s3704_s20 = smov [#allocation24]   ;;  %s902_s5 = int_to_ptr.vmem [resolvable:$true] %s901_s5 }
 0x106   : > { %s3521_s29 = scalar_lea.vmem %s902_s5, 16  ;;  %s3525_s26 = sshll.u32 %s3704_s20, 4  ;;  %s3526_s26 = int_to_ptr.vmem [resolvable:$false] %s3525_s26 }
 0x107   : > { %p3522_p3 = scmp.ne.s32.totalorder %s902_s5, %s3521_s29  ;;  %s3527_s16 = scalar_lea.vmem %s3526_s26, 32 }
 0x108   : > { %s899_s10 = scalar_lea.hbm %s4626_s14, %s3974_s25  ;;  %p3528_p6 = scmp.lt.s32.totalorder %s902_s5, %s3526_s26 }
 0x109   : > { %p3523_p2 = pnand %p3522_p3, %p3926_p12  ;;  %p3529_p9 = scmp.lt.s32.totalorder %s3527_s16, %s3521_s29 }
 0x10b   : > { %p3524_p1 = pneg %p3523_p2  ;;  %p3530_p11 = por %p3529_p9, %p3528_p6 }
 0x10d   : > { %p3531_p0 = pnand %p3530_p11, %p3524_p1 }
 0x10f   : > { %3534 = shalt.err (!%p3531_p0)
}
 0x110   : > { %3014 = dma.hbm_to_vmem [thread:$0]  (%p3926_p12), %s899_s10, 16, %s902_s5, %s892_s6  }
 0x111 PF: > { %p2764_p5 = scmp.ge.s32.totalorder %s3687_s4, 1  ;;  %p906_p8 = scmp.lt.s32.totalorder %s3687_s4, 5 }
 0x113   : > { %p907_p10 = pnand %p2764_p5, %p906_p8 }
 0x114   : > { %s4627_s24 = sld [smem:[#allocation40_spill]] (!%p907_p10) }
 0x115   : > { %910 = sbr.rel (%p907_p10) target bundleno = 4390 (0x1126), region = 100 }
 0x11a   : > { %s4167_s23 = sand.u32 1, %s4627_s24  }
 0x11b   : > { %s2765_s18 = sshll.u32 %s4167_s23, 3  ;;  %s913_s0 = scalar_lea.sflag [#allocation4], %s4167_s23 }
 0x11c   : > { %s4171_s30 = scalar_lea.vmem [#allocation3], %s2765_s18 }
 0x11d   : > { %3606 = dma.done.wait (%p3908_p7), %s913_s0, 128  }
 0x11e   : > { %3608 = vsyncadd (%p3908_p7), %s913_s0, 4294967168  ;;  %s4629_s17 = sld [smem:[#allocation44_spill]] }
 0x124   : > { %s4178_s12 = sand.u32 1, %s4629_s17  }
 0x125   : > { %s922_s19 = scalar_lea.sflag [#allocation7], %s4178_s12 }
 0x126   : > { %3610 = dma.done.wait (%p3908_p7), %s922_s19, 16  }
 0x127   : > { %3612 = vsyncadd (%p3908_p7), %s922_s19, 4294967280  ;;  %s4630_s1 = sld [smem:[#allocation37_spill]] }
 0x12d   : > { %s4187_s14 = sand.u32 1, %s4630_s1  }
 0x12e   : > { %3614 = dma.done.wait (%p3932_p13), %s922_s19, 16  }
 0x12f   : > { %3616 = vsyncadd (%p3932_p13), %s922_s19, 4294967280  ;;  %s938_s3 = scalar_lea.sflag [#allocation10], %s4178_s12 }
 0x130   : > { %3618 = dma.done.wait (%p3932_p13), %s938_s3, 32  }
 0x131   : > { %3620 = vsyncadd (%p3932_p13), %s938_s3, 4294967264  ;;  %s2766_s6 = sshll.u32 %s4187_s14, 4  ;;  %s954_s20 = scalar_lea.sflag [#allocation13], %s4178_s12 }
 0x132   : > { %s4203_s26 = scalar_lea.vmem [#allocation12], %s2766_s6 }
 0x133   : > { %3622 = dma.done.wait (%p3932_p13), %s954_s20, 272  }
 0x134   : > { %3624 = vsyncadd (%p3932_p13), %s954_s20, 4294967024  ;;  %s971_s24 = scalar_lea.sflag [#allocation16], %s4178_s12 }
 0x135   : > { %3626 = dma.done.wait (%p3932_p13), %s971_s24, 32  }
 0x136   : > { %3628 = vsyncadd (%p3932_p13), %s971_s24, 4294967264  ;;  %s987_s0 = scalar_lea.sflag [#allocation19], %s4178_s12  ;;  %s4218_s17 = scalar_lea.vmem [#allocation18], %s2766_s6 }
 0x137   : > { %3630 = dma.done.wait (%p3932_p13), %s987_s0, 272  }
 0x138   : > { %3632 = vsyncadd (%p3932_p13), %s987_s0, 4294967024  ;;  %s1004_s1 = scalar_lea.sflag [#allocation22], %s4178_s12 }
 0x139   : > { %3634 = dma.done.wait (%p3932_p13), %s1004_s1, 32  }
 0x13a   : > { %3636 = vsyncadd (%p3932_p13), %s1004_s1, 4294967264  ;;  %s1020_s20 = scalar_lea.sflag [#allocation25], %s4187_s14 }
 0x13b   : > { %3638 = dma.done.wait (%p3932_p13), %s1020_s20, 16  }
 0x13c   : > { %3640 = vsyncadd (%p3932_p13), %s1020_s20, 4294967280  ;;  %s4632_s0 = sld [smem:[#allocation42_spill]]  ;;  %s1151_s13 = scalar_lea.vmem [#allocation26], %s4167_s23 }
 0x13d   : > { %s4633_s25 = sld [smem:[#allocation55_spill]] }
 0x13e   : > { %s4634_s2 = sld [smem:[#allocation57_spill]] }
 0x13f   : > { %s4635_s7 = sld [smem:[#allocation59_spill]] }
 0x140   : > { %s4636_s9 = sld [smem:[#allocation67_spill]] }
 0x142   : > { %p1152_p7 = scmp.lt.s32.totalorder %s4632_s0, 1  ;;  %p2776_p12 = scmp.ne.s32.totalorder %s4632_s0, 0 }
 0x144   : > { %s1153_s12 = scalar_select %p1152_p7, %s4632_s0, 1 }
 0x145   : > { %1176 = sbr.rel (%p2776_p12) target bundleno = 332 (0x14c), region = 160 }
 0x146   : > { %s2824_s3 = sshll.u32 %s1153_s12, 4  ;;  %s2827_s19 = sshll.u32 %s1153_s12, 5 }
 0x147   : > { %s1156_s16 = scalar_lea.vmem %s4633_s25, %s2824_s3  ;;  %s1161_s24 = scalar_lea.vmem %s4634_s2, %s2824_s3 }
 0x148   : > { %s4249_s22 = scalar_lea.vmem %s4635_s7, %s2824_s3  ;;  %s4254_s11 = scalar_lea.vmem %s4636_s9, %s2827_s19 }
 0x14a   : > { %v1177_v0 = vld [vmem:[%s4171_s30] sm:$0xff]  ;;  %vm1178_vm0 = vcmask 261120  }
 0x14b   : > { %1179 = vst.msk [vmem:[#allocation2] sm:$0xff] %vm1178_vm0, %v1177_v0 }
 0x14c PF: > { %v3133_v1 = vld [vmem:[%s1156_s16 + $0x8] sm:$0xff]   ;;  %v3705_v2 = vmov 0.0   ;;  %v3134_v3 = vld [vmem:[%s1156_s16] sm:$0xff]   ;;  %vm3706_vm1 = vmmov 0   ;;  %vm1205_vm2 = vcmask 261120   ;;  %s4637_s7 = scalar_lea.vmem [#allocation9], %s4187_s14 }
 0x14d   : > { %2874 = vmatprep.subr.bf16.mxu1 %v3705_v2  ;;  %2890 = vmatprep.subr.bf16.mxu0 %v3705_v2  ;;  %v3135_v5 = vld [vmem:[%s1161_s24 + $0x8] sm:$0xff]   ;;  %v3136_v7 = vld [vmem:[%s1161_s24] sm:$0xff]   ;;  %s4638_s9 = scalar_lea.vmem [#allocation8], %s4187_s14  ;;  %vm1383_vm3 = vcmask 64512   ;;  %s3707_s8 = smov 120   ;;  %vm1453_vm4 = vcmask 1043456  }
 0x14e   : > { %2875 = vmatpush3.bf16.msra.mxu1 %v3133_v1  ;;  %2878 = vmatprep.mubr.msk.bf16.mxu1 %vm3706_vm1, %v3705_v2  ;;  %v2781_v12 = vld [vmem:[%s4637_s7] ss:$0 sm:$0xff]  ;;  %v3137_v23 = vld [vmem:[%s4249_s22 + $0x8] sm:$0xff]   ;;  %s4639_s30 = scalar_lea.vmem [#allocation6], %s4167_s23  ;;  %s4640_s2 = scalar_lea.vmem [#allocation11], %s4187_s14  ;;  %vm2181_vm5 = vcmask 523264  }
 0x14f   : > { %2876 = vmatprep.subr.bf16.mxu1 %v3705_v2  ;;  %2894 = vmatprep.mubr.msk.bf16.mxu0 %vm3706_vm1, %v3705_v2  ;;  %v2777_v13 = vld [vmem:[%s4638_s9] ss:$0 sm:$0xff]  ;;  %s3708_s10 = smov 112   ;;  %v1377_v1 = vld [vmem:[%s4203_s26 + $0x4] sm:$0xf]  ;;  %s3709_s5 = smov 104  }
 0x150   : > { %2891 = vmatpush3.bf16.msra.mxu0 %v3137_v23  ;;  %v3138_v24 = vld [vmem:[%s4249_s22] sm:$0xff]   ;;  %s4641_s29 = scalar_lea.vmem [#allocation14], %s4187_s14  ;;  %s4643_s16 = scalar_lea.vmem [#allocation17], %s4187_s14 }
 0x151   : > { %2892 = vmatprep.subr.bf16.mxu0 %v3705_v2  ;;  %v4312_v29 = vld [vmem:[%s4639_s30] ss:$0 sm:$0xff]  ;;  %s4644_s25 = scalar_lea.vmem [#allocation20], %s4187_s14  ;;  %s4646_s18 = scalar_lea.vmem [#allocation23], %s4187_s14 }
 0x152   : > { %v4263_v4 = vld [vmem:[#allocation2] sm:$0xff]  ;;  %2877 = vmatpush3.bf16.msra.mxu1 %v3134_v3  ;;  %v1618_v3 = vsel %vm1453_vm4, %v1377_v1, 0  ;;  %s4648_s19 = sld [smem:[#allocation42_spill]] }
 0x153   : > { %v1181_v6 = vpack.c.bf16 %v4263_v4, %v4263_v4  ;;  %2882 = vmatprep.subr.bf16.mxu1 %v3705_v2  ;;  %v2785_v52 = vld [vmem:[%s4640_s2] ss:$0 sm:$0xff] }
 0x154   : > { %2893 = vmatpush3.bf16.msra.mxu0 %v3138_v24 }
 0x155   : > { %2879 = vmatmul.mubr.msk.bf16.vlgmr.msra.gmra.mxu1 %vm1205_vm2, %v1181_v6  ;;  %2904 = vmatprep.subr.bf16.mxu0 %v3705_v2 }
 0x156   : > { %2883 = vmatpush3.bf16.msra.mxu1 %v3135_v5  ;;  %2886 = vmatprep.mubr.msk.bf16.mxu1 %vm3706_vm1, %v3705_v2 }
 0x157   : > { %2884 = vmatprep.subr.bf16.mxu1 %v3705_v2  ;;  %2895 = vmatmul.mubr.msk.bf16.vlgmr.msra.gmra.mxu0 %vm1205_vm2, %v1181_v6 }
 0x158   : > { %2906 = vmatprep.mubr.msk.bf16.mxu0 %vm3706_vm1, %v3705_v2  ;;  %p2817_p13 = scmp.ne.s32.totalorder %s4648_s19, 1 }
 0x159   : > { %s4649_s24 = sld [smem:[#allocation70_spill]] (!%p2817_p13) }
 0x15a   : > { %2885 = vmatpush3.bf16.msra.mxu1 %v3136_v7  ;;  %s4651_s30 = sld [smem:[#allocation71_spill]] (!%p2817_p13) }
 0x15b   : > { %2898 = vmatprep.subr.bf16.mxu1 %v3705_v2 }
 0x15d   : > { %2887 = vmatmul.mubr.msk.bf16.vlgmr.msra.gmra.mxu1 %vm1205_vm2, %v1181_v6 }
 0x15e   : > { %2900 = vmatprep.mubr.msk.bf16.mxu1 %vm3706_vm1, %v3705_v2 }
 0x15f   : > { %s4650_s0 = smov (!%p2817_p13), %s4649_s24 }
 0x215   : > { %v1243_v8 = vpop.f32.mrf.mxu1 }
 0x216   : > { %v1244_v17 = vadd.f32 %v2777_v13, %v1243_v8 }
 0x217   : > { %v2880_v9 = vpop.f32.mrf.mxu1  ;;  %v1369_v46 = vpop.f32.mrf.mxu0 }
 0x218   : > { %v4289_v22 = vpack.c.bf16 %v1244_v17, %v1244_v17  ;;  %v1370_v53 = vadd.f32 %v2785_v52, %v1369_v46  ;;  %v1376_v9 = vld [vmem:[%s4203_s26] sm:$0xf] }
 0x219   : > { %v1246_v10 = vpop.f32.mrf.mxu1  ;;  %v2896_v47 = vpop.f32.mrf.mxu0 }
 0x21a   : > { %v4321_v54 = vpack.c.bf16 %v1370_v53, %v1370_v53 }
 0x21b   : > { %v2881_v11 = vpop.f32.mrf.mxu1  ;;  %v1372_v48 = vpop.f32.mrf.mxu0 }
 0x21c   : > { %v1455_v55 = vsel %vm1453_vm4, %v4321_v54, 0 }
 0x21d   : > { %v1306_v14 = vpop.f32.mrf.mxu1  ;;  %v2897_v49 = vpop.f32.mrf.mxu0  ;;  %2905 = vmatpush3.bf16.msra.mxu0 %v1455_v55 }
 0x21e   : > { %v1307_v15 = vadd.f32 %v2781_v12, %v1306_v14  ;;  %2916 = vmatprep.subr.bf16.mxu0 %v3705_v2  ;;  %v1664_v12 = vsel %vm1453_vm4, %v1376_v9, 0 }
 0x21f   : > { %v2888_v16 = vpop.f32.mrf.mxu1 }
 0x220   : > { %v4283_v18 = vpack.c.bf16 %v1307_v15, %v1307_v15 }
 0x221   : > { %v1309_v19 = vpop.f32.mrf.mxu1 }
 0x222   : > { %1502 = vrot.lane.b32.xlu0 %v4283_v18, %s3707_s8  ;;  %v1388_v20 = vsel %vm1383_vm3, %v4283_v18, 0 }
 0x223   : > { %v2889_v21 = vpop.f32.mrf.mxu1  ;;  %2899 = vmatpush3.bf16.xpose.msra.mxu1 %v1388_v20 }
 0x224   : > { %2910 = vmatprep.subr.bf16.mxu1 %v3705_v2 }
 0x226   : > { %1499 = vrot.lane.b32.xlu0 %v4289_v22, %s3707_s8 }
 0x22a   : > { %2901 = vmatmul.mubr.msk.bf16.vlgmr.msra.gmra.mxu1 %vm1383_vm3, %v4289_v22 }
 0x22b   : > { %2912 = vmatprep.mubr.msk.bf16.mxu1 %vm3706_vm1, %v3705_v2 }
 0x294   : > { %v1503_v25 = vpop.permute.xlu0 %1502 }
 0x295   : > { %v1508_v26 = vsel %vm1383_vm3, %v1503_v25, 0 }
 0x296   : > { %2911 = vmatpush3.bf16.xpose.msra.mxu1 %v1508_v26 }
 0x297   : > { %2922 = vmatprep.subr.bf16.mxu1 %v3705_v2 }
 0x298   : > { %v1500_v27 = vpop.permute.xlu0 %1499 }
 0x29d   : > { %2913 = vmatmul.mubr.msk.bf16.vlgmr.msra.gmra.mxu1 %vm1383_vm3, %v1500_v27 }
 0x29e   : > { %2924 = vmatprep.mubr.msk.bf16.mxu1 %vm3706_vm1, %v3705_v2  ;;  %2923 = vmatpush3.bf16.msra.mxu1 %v1618_v3 }
 0x29f   : > { %2934 = vmatprep.subr.bf16.mxu1 %v3705_v2 }
 0x2ea   : > { %v1424_v28 = vpop.f32.mrf.mxu1 }
 0x2eb   : > { %v1430_v30 = vmul.f32 0.35355338, %v1424_v28 }
 0x2ec   : > { %v2902_v31 = vpop.f32.mrf.mxu1 }
 0x2ed   : > { %v1437_v32 = vadd.f32 %v4312_v29, %v1430_v30 }
 0x2ee   : > { %v1427_v33 = vpop.f32.mrf.mxu1 }
 0x2ef   : > { %v1438_v34 = vsel %vm1383_vm3, %v1437_v32, -inf }
 0x2f0   : > { %1439 = vmax.xlane.f32.xlu1 %v1438_v34  ;;  %v2903_v35 = vpop.f32.mrf.mxu1 }
 0x35d   : > { %v1544_v36 = vpop.f32.mrf.mxu1 }
 0x35e   : > { %v1550_v37 = vmul.f32 0.35355338, %v1544_v36 }
 0x35f   : > { %v2914_v38 = vpop.f32.mrf.mxu1 }
 0x360   : > { %v1551_v39 = vadd.f32 %v4312_v29, %v1550_v37 }
 0x361   : > { %v1547_v40 = vpop.f32.mrf.mxu1 }
 0x362   : > { %v1552_v41 = vsel %vm1383_vm3, %v1551_v39, -inf }
 0x363   : > { %1553 = vmax.xlane.f32.xlu1 %v1552_v41  ;;  %v2915_v42 = vpop.f32.mrf.mxu1 }
 0x379   : > { %v1440_v43 = vpop.xlane.xlu1 %1439 }
 0x37a   : > { %v1441_v44 = vsub.f32 %v1437_v32, %v1440_v43 }
 0x37c   : > { %v1442_v45 = vmul.f32 1.442695, %v1441_v44 }
 0x37e   : > { %3145 = vpow2.f32 %v1442_v45 }
 0x38b   : > { %v3146_v50 = vpop.eup %3145 }
 0x38c   : > { %v1444_v51 = vsel %vm1383_vm3, %v3146_v50, 0.0 }
 0x38d   : > { %1445 = vadd.xlane.f32.xlu0 %v1444_v51 }
 0x3a3   : > { %1770 = vrot.lane.b32.xlu0 %v4321_v54, %s3708_s10 }
 0x3ec   : > { %v1554_v56 = vpop.xlane.xlu1 %1553 }
 0x3ed   : > { %v1555_v57 = vsub.f32 %v1551_v39, %v1554_v56 }
 0x3ef   : > { %v1556_v58 = vmul.f32 1.442695, %v1555_v57 }
 0x3f1   : > { %3147 = vpow2.f32 %v1556_v58 }
 0x3fe   : > { %v3148_v59 = vpop.eup %3147 }
 0x3ff   : > { %v1558_v60 = vsel %vm1383_vm3, %v3148_v59, 0.0 }
 0x400   : > { %1559 = vadd.xlane.f32.xlu1 %v1558_v60 }
 0x411   : > { %1565 = vrot.lane.b32.xlu1 %v4321_v54, %s3707_s8 }
 0x415   : > { %1708 = vrot.lane.b32.xlu1 %v4283_v18, %s3708_s10 }
 0x416   : > { %v1446_v61 = vpop.xlane.xlu0 %1445 }
 0x417   : > { %3149 = vrcp.f32 %v1446_v61 }
 0x419   : > { %1706 = vrot.lane.b32.xlu1 %v4289_v22, %s3708_s10 }
 0x41a   : > { %v1771_v13 = vpop.permute.xlu0 %1770 }
 0x41b   : > { %v1776_v17 = vsel %vm1453_vm4, %v1771_v13, 0 }
 0x424   : > { %v3150_v62 = vpop.eup %3149 }
 0x425   : > { %v1448_v63 = vmul.f32 %v3150_v62, %v3146_v50 }
 0x427   : > { %v1449_v0 = vpack.c.bf16 %v1448_v63, %v1448_v63 }
 0x429   : > { %2907 = vmatmul.mubr.msk.bf16.vlgmr.msra.gmra.mxu0 %vm1383_vm3, %v1449_v0 }
 0x42a   : > { %2918 = vmatprep.mubr.msk.bf16.mxu0 %vm3706_vm1, %v3705_v2 }
 0x489   : > { %v1560_v5 = vpop.xlane.xlu1 %1559 }
 0x48a   : > { %3151 = vrcp.f32 %v1560_v5 }
 0x48d   : > { %v1566_v6 = vpop.permute.xlu1 %1565 }
 0x48e   : > { %v1571_v7 = vsel %vm1453_vm4, %v1566_v6, 0 }
 0x48f   : > { %2917 = vmatpush3.bf16.msra.mxu0 %v1571_v7 }
 0x490   : > { %2928 = vmatprep.subr.bf16.mxu0 %v3705_v2 }
 0x491   : > { %v1709_v21 = vpop.permute.xlu1 %1708 }
 0x492   : > { %v1714_v26 = vsel %vm1383_vm3, %v1709_v21, 0 }
 0x495   : > { %v1707_v30 = vpop.permute.xlu1 %1706 }
 0x497   : > { %v3152_v8 = vpop.eup %3151 }
 0x498   : > { %v1562_v10 = vmul.f32 %v3152_v8, %v3148_v59 }
 0x49a   : > { %v1563_v11 = vpack.c.bf16 %v1562_v10, %v1562_v10 }
 0x49c   : > { %2919 = vmatmul.mubr.msk.bf16.vlgmr.msra.gmra.mxu0 %vm1383_vm3, %v1563_v11 }
 0x49d   : > { %2929 = vmatpush3.bf16.msra.mxu0 %v1664_v12  ;;  %2930 = vmatprep.mubr.msk.bf16.mxu0 %vm3706_vm1, %v3705_v2 }
 0x49e   : > { %2940 = vmatprep.subr.bf16.mxu0 %v3705_v2 }
 0x4e9   : > { %v1491_v14 = vpop.f32.mrf.mxu0 }
 0x4ea   : > { %v1497_v15 = vpack.c.bf16 %v1491_v14, %v1491_v14 }
 0x4eb   : > { %v2908_v16 = vpop.f32.mrf.mxu0 }
 0x4ec   : > { %2931 = vmatmul.mubr.msk.bf16.vlgmr.msra.gmra.mxu0 %vm1383_vm3, %v1497_v15 }
 0x4ed   : > { %2941 = vmatpush3.bf16.msra.mxu0 %v1776_v17  ;;  %v1494_v19 = vpop.f32.mrf.mxu0  ;;  %2942 = vmatprep.mubr.msk.bf16.mxu0 %vm3706_vm1, %v3705_v2 }
 0x4ee   : > { %2952 = vmatprep.subr.bf16.mxu0 %v3705_v2  ;;  %v1379_v19 = vld [vmem:[%s4203_s26 + $0xc] sm:$0xf] }
 0x4ef   : > { %v2909_v20 = vpop.f32.mrf.mxu0 }
 0x4f0   : > { %v1983_v20 = vsel %vm1453_vm4, %v1379_v19, 0 }
 0x55c   : > { %v1607_v23 = vpop.f32.mrf.mxu0 }
 0x55d   : > { %v1613_v24 = vpack.c.bf16 %v1607_v23, %v1607_v23 }
 0x55e   : > { %v2920_v25 = vpop.f32.mrf.mxu0 }
 0x55f   : > { %2925 = vmatmul.mubr.msk.bf16.vlgmr.msra.gmra.mxu1 %vm1383_vm3, %v1613_v24 }
 0x560   : > { %2935 = vmatpush3.bf16.xpose.msra.mxu1 %v1714_v26  ;;  %v1610_v27 = vpop.f32.mrf.mxu0  ;;  %2936 = vmatprep.mubr.msk.bf16.mxu1 %vm3706_vm1, %v3705_v2 }
 0x561   : > { %2946 = vmatprep.subr.bf16.mxu1 %v3705_v2 }
 0x562   : > { %v2921_v28 = vpop.f32.mrf.mxu0 }
 0x567   : > { %2937 = vmatmul.mubr.msk.bf16.vlgmr.msra.gmra.mxu1 %vm1383_vm3, %v1707_v30 }
 0x568   : > { %2948 = vmatprep.mubr.msk.bf16.mxu1 %vm3706_vm1, %v3705_v2 }
 0x5ac   : > { %v4359_v31 = vpop.f32.mrf.mxu0 }
 0x5ae   : > { %v2932_v32 = vpop.f32.mrf.mxu0 }
 0x5b0   : > { %v1703_v33 = vpop.f32.mrf.mxu0 }
 0x5b2   : > { %v2933_v34 = vpop.f32.mrf.mxu0 }
 0x61f   : > { %v4361_v35 = vpop.f32.mrf.mxu1 }
 0x621   : > { %v2926_v36 = vpop.f32.mrf.mxu1 }
 0x623   : > { %v1657_v37 = vpop.f32.mrf.mxu1 }
 0x625   : > { %v2927_v38 = vpop.f32.mrf.mxu1 }
 0x627   : > { %v1750_v39 = vpop.f32.mrf.mxu1 }
 0x628   : > { %v1756_v40 = vmul.f32 0.35355338, %v1750_v39 }
 0x629   : > { %v2938_v41 = vpop.f32.mrf.mxu1 }
 0x62a   : > { %v1757_v42 = vadd.f32 %v4312_v29, %v1756_v40 }
 0x62b   : > { %v1753_v43 = vpop.f32.mrf.mxu1 }
 0x62c   : > { %v1758_v44 = vsel %vm1383_vm3, %v1757_v42, -inf }
 0x62d   : > { %1759 = vmax.xlane.f32.xlu1 %v1758_v44  ;;  %v2939_v45 = vpop.f32.mrf.mxu1 }
 0x6b6   : > { %v1760_v46 = vpop.xlane.xlu1 %1759 }
 0x6b7   : > { %v1761_v47 = vsub.f32 %v1757_v42, %v1760_v46 }
 0x6b9   : > { %v1762_v48 = vmul.f32 1.442695, %v1761_v47 }
 0x6bb   : > { %3153 = vpow2.f32 %v1762_v48  ;;  %v3139_v48 = vld [vmem:[%s4218_s17 + $0x8] sm:$0xff]  }
 0x6c8   : > { %v3154_v49 = vpop.eup %3153 }
 0x6c9   : > { %v1764_v50 = vsel %vm1383_vm3, %v3154_v49, 0.0 }
 0x6ca   : > { %1765 = vadd.xlane.f32.xlu0 %v1764_v50 }
 0x6e0   : > { %1868 = vrot.lane.b32.xlu0 %v4283_v18, %s3709_s5 }
 0x6e4   : > { %1866 = vrot.lane.b32.xlu0 %v4289_v22, %s3709_s5  ;;  %v1378_v22 = vld [vmem:[%s4203_s26 + $0x8] sm:$0xf]  ;;  %s4642_s26 = scalar_lea.vmem [#allocation15], %s4187_s14 }
 0x6e5   : > { %v1823_v58 = vsel %vm1453_vm4, %v1378_v22, 0 }
 0x6e6   : > { %2947 = vmatpush3.bf16.msra.mxu1 %v1823_v58  ;;  %v3141_v58 = vld [vmem:[%s4254_s11 + $0x18] sm:$0xff]  }
 0x6e7   : > { %2958 = vmatprep.subr.bf16.mxu1 %v3705_v2 }
 0x753   : > { %v1766_v51 = vpop.xlane.xlu0 %1765 }
 0x754   : > { %3155 = vrcp.f32 %v1766_v51 }
 0x757   : > { %v1869_v55 = vpop.permute.xlu0 %1868 }
 0x758   : > { %v1874_v57 = vsel %vm1383_vm3, %v1869_v55, 0 }
 0x75b   : > { %v1867_v18 = vpop.permute.xlu0 %1866 }
 0x761   : > { %v3156_v52 = vpop.eup %3155 }
 0x762   : > { %v1768_v53 = vmul.f32 %v3156_v52, %v3154_v49  ;;  %v3140_v49 = vld [vmem:[%s4218_s17] sm:$0xff]   ;;  %s4647_s17 = scalar_lea.vmem [#allocation24], %s4187_s14 }
 0x764   : > { %v1769_v56 = vpack.c.bf16 %v1768_v53, %v1768_v53  ;;  %v2803_v53 = vld [vmem:[%s4642_s26] ss:$0 sm:$0xff] }
 0x766   : > { %2943 = vmatmul.mubr.msk.bf16.vlgmr.msra.gmra.mxu0 %vm1383_vm3, %v1769_v56  ;;  %v2804_v56 = vld [vmem:[%s4643_s16] ss:$0 sm:$0xff] }
 0x767   : > { %2953 = vmatpush3.bf16.xpose.msra.mxu0 %v1874_v57  ;;  %2954 = vmatprep.mubr.msk.bf16.mxu0 %vm3706_vm1, %v3705_v2 }
 0x768   : > { %2964 = vmatprep.subr.bf16.mxu0 %v3705_v2 }
 0x76e   : > { %2955 = vmatmul.mubr.msk.bf16.vlgmr.msra.gmra.mxu0 %vm1383_vm3, %v1867_v18 }
 0x76f   : > { %2966 = vmatprep.mubr.msk.bf16.mxu0 %vm3706_vm1, %v3705_v2  ;;  %2965 = vmatpush3.bf16.msra.mxu0 %v1983_v20 }
 0x770   : > { %2978 = vmatprep.subr.bf16.mxu0 %v3705_v2 }
 0x826   : > { %v1812_v59 = vpop.f32.mrf.mxu0 }
 0x827   : > { %v1818_v60 = vpack.c.bf16 %v1812_v59, %v1812_v59  ;;  %v3142_v59 = vld [vmem:[%s4254_s11 + $0x10] sm:$0xff]  }
 0x828   : > { %v2944_v61 = vpop.f32.mrf.mxu0 }
 0x829   : > { %2949 = vmatmul.mubr.msk.bf16.vlgmr.msra.gmra.mxu1 %vm1383_vm3, %v1818_v60  ;;  %v3143_v60 = vld [vmem:[%s4254_s11 + $0x8] sm:$0xff]   ;;  %v3144_v61 = vld [vmem:[%s4254_s11] sm:$0xff]   ;;  %s4645_s11 = scalar_lea.vmem [#allocation21], %s4187_s14 }
 0x82a   : > { %v1815_v62 = vpop.f32.mrf.mxu0  ;;  %2960 = vmatprep.mubr.msk.bf16.mxu1 %vm3706_vm1, %v3705_v2 }
 0x82b   : > { %v2805_v62 = vld [vmem:[%s4644_s25] ss:$0 sm:$0xff] }
 0x82c   : > { %v2945_v63 = vpop.f32.mrf.mxu0 }
 0x82e   : > { %v1910_v0 = vpop.f32.mrf.mxu0 }
 0x82f   : > { %v1916_v1 = vmul.f32 0.35355338, %v1910_v0 }
 0x830   : > { %v2956_v3 = vpop.f32.mrf.mxu0 }
 0x831   : > { %v1917_v5 = vadd.f32 %v4312_v29, %v1916_v1  ;;  %v1701_v29 = vadd.f32 %v4359_v31, %v4361_v35  ;;  %v2802_v35 = vld [vmem:[%s4641_s29] ss:$0 sm:$0xff] }
 0x832   : > { %v1913_v6 = vpop.f32.mrf.mxu0 }
 0x833   : > { %v1918_v7 = vsel %vm1383_vm3, %v1917_v5, -inf }
 0x834   : > { %1919 = vmax.xlane.f32.xlu0 %v1918_v7  ;;  %v2957_v8 = vpop.f32.mrf.mxu0 }
 0x8bd   : > { %v1920_v9 = vpop.xlane.xlu0 %1919 }
 0x8be   : > { %v1921_v10 = vsub.f32 %v1917_v5, %v1920_v9 }
 0x8c0   : > { %v1922_v11 = vmul.f32 1.442695, %v1921_v10 }
 0x8c2   : > { %3157 = vpow2.f32 %v1922_v11 }
 0x8cf   : > { %v3158_v12 = vpop.eup %3157 }
 0x8d0   : > { %v1924_v13 = vsel %vm1383_vm3, %v3158_v12, 0.0 }
 0x8d1   : > { %1925 = vadd.xlane.f32.xlu1 %v1924_v13 }
 0x8e2   : > { %1930 = vrot.lane.b32.xlu1 %v4321_v54, %s3709_s5 }
 0x8e9   : > { %v1859_v14 = vpop.f32.mrf.mxu1 }
 0x8ea   : > { %v1865_v15 = vadd.f32 %v1859_v14, %v1701_v29  ;;  %v2809_v14 = vld [vmem:[%s4645_s11] ss:$0 sm:$0xff] }
 0x8eb   : > { %v2950_v16 = vpop.f32.mrf.mxu1 }
 0x8ed   : > { %v1862_v17 = vpop.f32.mrf.mxu1 }
 0x8ef   : > { %v2951_v21 = vpop.f32.mrf.mxu1 }
 0x95a   : > { %v1926_v23 = vpop.xlane.xlu1 %1925 }
 0x95b   : > { %3159 = vrcp.f32 %v1926_v23 }
 0x95e   : > { %v1931_v24 = vpop.permute.xlu1 %1930 }
 0x95f   : > { %v1936_v25 = vsel %vm1453_vm4, %v1931_v24, 0 }
 0x960   : > { %2959 = vmatpush3.bf16.msra.mxu1 %v1936_v25 }
 0x961   : > { %2970 = vmatprep.subr.bf16.mxu1 %v3705_v2 }
 0x968   : > { %v3160_v54 = vpop.eup %3159 }
 0x969   : > { %v1928_v26 = vmul.f32 %v3160_v54, %v3158_v12 }
 0x96b   : > { %v1929_v27 = vpack.c.bf16 %v1928_v26, %v1928_v26 }
 0x96d   : > { %2961 = vmatmul.mubr.msk.bf16.vlgmr.msra.gmra.mxu1 %vm1383_vm3, %v1929_v27 }
 0x96e   : > { %2974 = vmatprep.mubr.msk.bf16.mxu1 %vm3706_vm1, %v3705_v2  ;;  %2971 = vmatpush3.bf16.msra.mxu1 %v3139_v48 }
 0x96f   : > { %2972 = vmatprep.subr.bf16.mxu1 %v3705_v2 }
 0x972   : > { %2973 = vmatpush3.bf16.msra.mxu1 %v3140_v49 }
 0xa2d   : > { %v1972_v28 = vpop.f32.mrf.mxu1 }
 0xa2e   : > { %v1978_v30 = vpack.c.bf16 %v1972_v28, %v1972_v28 }
 0xa2f   : > { %v2962_v31 = vpop.f32.mrf.mxu1 }
 0xa30   : > { %2967 = vmatmul.mubr.msk.bf16.vlgmr.msra.gmra.mxu0 %vm1383_vm3, %v1978_v30 }
 0xa31   : > { %v1975_v32 = vpop.f32.mrf.mxu1  ;;  %2986 = vmatprep.mubr.msk.bf16.mxu0 %vm3706_vm1, %v3705_v2  ;;  %2979 = vmatpush3.bf16.msra.mxu0 %v3141_v58 }
 0xa32   : > { %2980 = vmatprep.subr.bf16.mxu0 %v3705_v2 }
 0xa33   : > { %v2963_v33 = vpop.f32.mrf.mxu1 }
 0xa34   : > { %v2815_v33 = vld [vmem:[%s4646_s18] ss:$0 sm:$0xff] }
 0xa35   : > { %2981 = vmatpush3.bf16.msra.mxu0 %v3142_v59 }
 0xa36   : > { %2982 = vmatprep.subr.bf16.mxu0 %v3705_v2 }
 0xa39   : > { %2983 = vmatpush3.bf16.msra.mxu0 %v3143_v60 }
 0xa3a   : > { %2984 = vmatprep.subr.bf16.mxu0 %v3705_v2 }
 0xa3d   : > { %2985 = vmatpush3.bf16.msra.mxu0 %v3144_v61 }
 0xaf0   : > { %v2019_v34 = vpop.f32.mrf.mxu0 }
 0xaf1   : > { %v2025_v36 = vadd.f32 %v2019_v34, %v1865_v15 }
 0xaf2   : > { %v2968_v37 = vpop.f32.mrf.mxu0 }
 0xaf3   : > { %v2033_v38 = vadd.f32 %v2802_v35, %v2025_v36  ;;  %v2816_v35 = vld [vmem:[%s4647_s17] ss:$0 sm:$0xff] }
 0xaf4   : > { %v2022_v39 = vpop.f32.mrf.mxu0 }
 0xaf5   : > { %v2034_v40 = vadd.f32 %v2033_v38, %v4263_v4 }
 0xaf6   : > { %v2969_v41 = vpop.f32.mrf.mxu0 }
 0xaf7   : > { %v2037_v42 = vsel %vm1205_vm2, %v2034_v40, 0.0 }
 0xaf8   : > { %2038 = vadd.xlane.f32.xlu1 %v2037_v42 }
 0xb81   : > { %v2039_v43 = vpop.xlane.xlu1 %2038 }
 0xb82   : > { %v2041_v44 = vmul.f32 0.03125, %v2039_v43 }
 0xb84   : > { %v2042_v45 = vsub.f32 %v2034_v40, %v2041_v44 }
 0xb86   : > { %v2043_v46 = vmul.f32 %v2042_v45, %v2042_v45 }
 0xb88   : > { %v2044_v47 = vsel %vm1205_vm2, %v2043_v46, 0.0 }
 0xb89   : > { %2045 = vadd.xlane.f32.xlu0 %v2044_v47 }
 0xc12   : > { %v2046_v4 = vpop.xlane.xlu0 %2045 }
 0xc13   : > { %v2047_v50 = vmul.f32 0.03125, %v2046_v4 }
 0xc15   : > { %v2048_v51 = vadd.f32 1e-12, %v2047_v50 }
 0xc17   : > { %3161 = vrsqrt.f32 %v2048_v51 }
 0xc24   : > { %v3162_v52 = vpop.eup %3161 }
 0xc25   : > { %v2050_v55 = vmul.f32 %v3162_v52, %v2042_v45 }
 0xc27   : > { %v2057_v57 = vmul.f32 %v2803_v53, %v2050_v55 }
 0xc29   : > { %v2064_v18 = vadd.f32 %v2804_v56, %v2057_v57 }
 0xc2b   : > { %v2065_v22 = vpack.c.bf16 %v2064_v18, %v2064_v18 }
 0xc2d   : > { %2975 = vmatmul.mubr.msk.bf16.vlgmr.msra.gmra.mxu1 %vm1205_vm2, %v2065_v22 }
 0xced   : > { %v2126_v63 = vpop.f32.mrf.mxu1 }
 0xcee   : > { %v2127_v0 = vadd.f32 %v2805_v62, %v2126_v63 }
 0xcef   : > { %v2976_v1 = vpop.f32.mrf.mxu1 }
 0xcf0   : > { %v2133_v3 = vmul.f32 0.044715, %v2127_v0  ;;  %v2132_v12 = vmul.f32 0.5, %v2127_v0 }
 0xcf1   : > { %v2129_v5 = vpop.f32.mrf.mxu1 }
 0xcf2   : > { %v2134_v6 = vmul.f32 %v2133_v3, %v2127_v0 }
 0xcf3   : > { %v2977_v7 = vpop.f32.mrf.mxu1 }
 0xcf4   : > { %v2135_v8 = vmul.f32 %v2134_v6, %v2127_v0 }
 0xcf6   : > { %v2136_v9 = vadd.f32 %v2135_v8, %v2127_v0 }
 0xcf8   : > { %v2137_v10 = vmul.f32 0.7978846, %v2136_v9 }
 0xcfa   : > { %3163 = vtanh.f32 %v2137_v10 }
 0xd07   : > { %v3164_v11 = vpop.eup %3163 }
 0xd08   : > { %v2139_v13 = vadd.f32 1.0, %v3164_v11 }
 0xd0a   : > { %v2140_v29 = vmul.f32 %v2139_v13, %v2132_v12 }
 0xd0c   : > { %v2141_v2 = vpack.c.bf16 %v2140_v29, %v2140_v29 }
 0xd0e   : > { %2987 = vmatmul.mubr.msk.bf16.vlgmr.msra.gmra.mxu0 %vm2181_vm5, %v2141_v2 }
 0xdce   : > { %v2219_v15 = vpop.f32.mrf.mxu0 }
 0xdcf   : > { %v2220_v16 = vadd.f32 %v2809_v14, %v2219_v15 }
 0xdd0   : > { %v2988_v17 = vpop.f32.mrf.mxu0 }
 0xdd1   : > { %v2225_v19 = vadd.f32 %v2220_v16, %v2064_v18 }
 0xdd2   : > { %v2222_v20 = vpop.f32.mrf.mxu0 }
 0xdd3   : > { %v2228_v21 = vsel %vm1205_vm2, %v2225_v19, 0.0 }
 0xdd4   : > { %2229 = vadd.xlane.f32.xlu0 %v2228_v21  ;;  %v2989_v23 = vpop.f32.mrf.mxu0 }
 0xe5d   : > { %v2230_v24 = vpop.xlane.xlu0 %2229 }
 0xe5e   : > { %v2231_v25 = vmul.f32 0.03125, %v2230_v24 }
 0xe60   : > { %v2232_v54 = vsub.f32 %v2225_v19, %v2231_v25 }
 0xe62   : > { %v2233_v26 = vmul.f32 %v2232_v54, %v2232_v54 }
 0xe64   : > { %v2234_v27 = vsel %vm1205_vm2, %v2233_v26, 0.0 }
 0xe65   : > { %2235 = vadd.xlane.f32.xlu0 %v2234_v27 }
 0xeee   : > { %v2236_v28 = vpop.xlane.xlu0 %2235 }
 0xeef   : > { %v2237_v30 = vmul.f32 0.03125, %v2236_v28 }
 0xef1   : > { %v2238_v31 = vadd.f32 1e-12, %v2237_v30 }
 0xef3   : > { %3165 = vrsqrt.f32 %v2238_v31 }
 0xf00   : > { %v3166_v32 = vpop.eup %3165 }
 0xf01   : > { %v2240_v34 = vmul.f32 %v3166_v32, %v2232_v54 }
 0xf03   : > { %v2247_v36 = vmul.f32 %v2815_v33, %v2240_v34  ;;  %2259 = sbr.rel (%p2817_p13) target bundleno = 4366 (0x110e), region = 164 }
 0xf05   : > { %v2254_v37 = vadd.f32 %v2816_v35, %v2247_v36 }
 0xf07   : > { %2255 = vst.msk [vmem:[#allocation2] sm:$0xff] %vm1205_vm2, %v2254_v37 }
 0xf08   : > { %v2263_v38 = vld [vmem:[%s4649_s24 + $0x18] sm:$0xff]  ;;  %v3710_v39 = vmov 0.0   ;;  %v2262_v40 = vld [vmem:[%s4650_s0 + $0x10] sm:$0xff]  ;;  %vm3711_vm6 = vmmov 0   ;;  %v2261_v41 = vld [vmem:[%s4650_s0 + $0x8] sm:$0xff]  ;;  %v2338_v43 = vlaneseq  ;;  %vm2342_vm8 = vcmask 1040384  }
 0xf09   : > { %2990 = vmatprep.subr.mxu0 %v3710_v39  ;;  %2998 = vmatprep.mubr.msk.f32.mxu0 %vm3711_vm6, %v3710_v39  ;;  %v2260_v42 = vld [vmem:[%s4650_s0] sm:$0xff] }
 0xf0a   : > { %2991 = vmatpush3.msra.mxu0 %v2263_v38  ;;  %v2339_v44 = vand.u32 127, %v2338_v43  ;;  %v2264_v45 = vld [vmem:[%s4651_s30] sm:$0x1] }
 0xf0b   : > { %2992 = vmatprep.subr.mxu0 %v3710_v39 }
 0xf0c   : > { %2993 = vmatpush3.msra.mxu0 %v2262_v40  ;;  %vm2340_vm7 = vcmp.lt.s32.totalorder %v2339_v44, 10 }
 0xf0d   : > { %2994 = vmatprep.subr.mxu0 %v3710_v39 }
 0xf0e   : > { %2995 = vmatpush3.msra.mxu0 %v2261_v41 }
 0xf0f   : > { %2996 = vmatprep.subr.mxu0 %v3710_v39 }
 0xf10   : > { %2997 = vmatpush3.msra.mxu0 %v2260_v42 }
 0xf11   : > { %2999 = vmatmul.mubr.msk.f32.vlgmr.msra.gmra.mxu0 %vm1205_vm2, %v2254_v37 }
 0xfd1   : > { %v2334_v46 = vpop.f32.mrf.mxu0 }
 0xfd2   : > { %v2335_v47 = vadd.f32 %v2334_v46, %v2264_v45 }
 0xfd3   : > { %v3000_v48 = vpop.f32.mrf.mxu0 }
 0xfd4   : > { %v2341_v49 = vsel %vm2340_vm7, %v2335_v47, -1e+30 }
 0xfd5   : > { %v2343_v4 = vsel %vm2342_vm8, %v2341_v49, -inf }
 0xfd6   : > { %2344 = vmax.xlane.f32.xlu0 %v2343_v4 }
0x105f   : > { %v2345_v50 = vpop.xlane.xlu0 %2344 }
0x1060   : > { %v2346_v51 = vsub.f32 %v2341_v49, %v2345_v50 }
0x1062   : > { %v2347_v52 = vmul.f32 1.442695, %v2346_v51 }
0x1064   : > { %3167 = vpow2.f32 %v2347_v52 }
0x1071   : > { %v3168_v53 = vpop.eup %3167 }
0x1072   : > { %v2349_v55 = vsel %vm2342_vm8, %v3168_v53, 0.0 }
0x1073   : > { %2350 = vadd.xlane.f32.xlu0 %v2349_v55 }
0x10fc   : > { %v2351_v56 = vpop.xlane.xlu0 %2350 }
0x10fd   : > { %3169 = vrcp.f32 %v2351_v56 }
0x110a   : > { %v3170_v57 = vpop.eup %3169 }
0x110b   : > { %v2353_v18 = vmul.f32 %v3170_v57, %v3168_v53 }
0x110d   : > { %2354 = vst [vmem:[%s1151_s13] sm:$0x1] %v2353_v18 }
0x110e PF: > { %s4652_s2 = sld [smem:[#allocation43_spill]]  ;;  %s2368_s11 = sshll.u32 %s1151_s13, 4  ;;  %s2369_s11 = int_to_ptr.vmem [resolvable:$true] %s2368_s11 }
0x110f   : > { %s4654_s16 = sld [smem:[#allocation72_spill]]  ;;  %s2356_s18 = scalar_lea.sflag [#allocation5], %s4167_s23 }
0x1110   : > { %s3535_s17 = scalar_lea.vmem %s2369_s11, 16  ;;  %s3712_s19 = smov [#allocation26]  }
0x1111   : > { %p3536_p10 = scmp.ne.s32.totalorder %s2369_s11, %s3535_s17  ;;  %s3539_s3 = sshll.u32 %s3712_s19, 4  ;;  %s3540_s3 = int_to_ptr.vmem [resolvable:$false] %s3539_s3 }
0x1112   : > { %s3541_s6 = scalar_lea.vmem %s3540_s3, 32  ;;  %p3542_p1 = scmp.lt.s32.totalorder %s2369_s11, %s3540_s3 }
0x1113   : > { %p3537_p3 = pnand %p3536_p10, %p3940_p4  ;;  %p3543_p6 = scmp.lt.s32.totalorder %s3541_s6, %s3535_s17 }
0x1114   : > { %s2819_s5 = sshll.u32 %s4652_s2, 4 }
0x1115   : > { %s2366_s25 = scalar_lea.hbm %s4654_s16, %s2819_s5  ;;  %p3538_p2 = pneg %p3537_p3 }
0x1116   : > { %p3544_p9 = por %p3543_p6, %p3542_p1 }
0x1118   : > { %p3545_p11 = pnand %p3544_p9, %p3538_p2 }
0x111a   : > { %3548 = shalt.err (!%p3545_p11)
}
0x111b   : > { %s3549_s24 = scalar_lea.hbm %s2366_s25, 16  ;;  %s3553_s12 = scalar_lea.hbm %s4654_s16, 32 }
0x111c   : > { %p3550_p0 = scmp.ne.s32.totalorder %s2366_s25, %s3549_s24  ;;  %p3554_p7 = scmp.lt.s32.totalorder %s2366_s25, %s4654_s16 }
0x111d   : > { %p3555_p12 = scmp.lt.s32.totalorder %s3553_s12, %s3549_s24 }
0x111e   : > { %p3551_p5 = pnand %p3550_p0, %p3940_p4 }
0x111f   : > { %p3556_p13 = por %p3555_p12, %p3554_p7 }
0x1120   : > { %p3552_p8 = pneg %p3551_p5 }
0x1122   : > { %p3557_p10 = pnand %p3556_p13, %p3552_p8 }
0x1124   : > { %3560 = shalt.err (!%p3557_p10)
}
0x1125   : > { %3029 = dma.vmem_to_hbm [thread:$0]  (%p3940_p4), %s2369_s11, 16, %s2366_s25, %s2356_s18  }
0x1126 PF: > { %s4655_s22 = sld [smem:[#allocation39_spill]]  ;;  %p3035_p3 = scmp.ge.s32.totalorder %s3687_s4, 2 }
0x1127   : > { %s4656_s20 = sld [smem:[#allocation52_spill]] }
0x112c   : > { %s2380_s7 = sand.u32 1, %s4655_s22  }
0x112d   : > { %p4657_p2 = scmp.ne.s32.totalorder %s4656_s20, 0  ;;  %s2381_s9 = scalar_lea.sflag [#allocation5], %s2380_s7 }
0x112f   : > { %p3032_p1 = pnand %p3035_p3, %p4657_p2 }
0x1131   : > { %p3033_p6 = pneg %p3032_p1 }
0x1133   : > { %3642 = dma.done.wait (%p3033_p6), %s2381_s9, 16  }
0x1134   : > { %3644 = vsyncadd (%p3033_p6), %s2381_s9, 4294967280  ;;  %s57_s4 = sadd.s32 1, %s3687_s4   ;;  %s4658_s1 = sld [smem:[#allocation37_spill]] }
0x1135   : > { %p54_p9 = scmp.ge.s32.totalorder %s57_s4, 6   ;;  %s4659_s22 = sld [smem:[#allocation38_spill]] }
0x1136   : > { %s4660_s23 = sld [smem:[#allocation48_spill]]  ;;  %s4666_s3 = smov %s3679_s27 }
0x1137   : > { %s4661_s24 = sld [smem:[#allocation40_spill]]  ;;  %s4667_s26 = smov %s3683_s28 }
0x1138   : > { %s4662_s2 = sld [smem:[#allocation41_spill]] }
0x1139   : > { %s4663_s25 = sld [smem:[#allocation49_spill]] }
0x113a   : > { %s4664_s8 = sld [smem:[#allocation45_spill]] }
0x113b   : > { %s4665_s30 = sld [smem:[#allocation46_spill]] }
0x113d   :  { %56 = sbr.rel (!%p54_p9) target bundleno = 44 (0x2c), region = 322 }
0x1140   : > { %s4668_s27 = smov %s4664_s8 }
0x1141   : > { %s4669_s28 = smov %s4665_s30 }
0x1142   :  { %2385 = vsyncpa [#allocation4], 1 }
0x1143   :  { %2387 = vsyncpa [#allocation4 + $0x1], 1 }
0x1144   :  { %2388 = vsyncpa [#allocation7], 1 }
0x1145   :  { %2390 = vsyncpa [#allocation7 + $0x1], 1 }
0x1146   :  { %2391 = vsyncpa [#allocation10], 1 }
0x1147   :  { %2393 = vsyncpa [#allocation10 + $0x1], 1 }
0x1148   :  { %2394 = vsyncpa [#allocation13], 1 }
0x1149   :  { %2396 = vsyncpa [#allocation13 + $0x1], 1 }
0x114a   :  { %2397 = vsyncpa [#allocation16], 1 }
0x114b   :  { %2399 = vsyncpa [#allocation16 + $0x1], 1 }
0x114c   :  { %2400 = vsyncpa [#allocation19], 1 }
0x114d   :  { %2402 = vsyncpa [#allocation19 + $0x1], 1 }
0x114e   :  { %2403 = vsyncpa [#allocation22], 1 }
0x114f   :  { %2405 = vsyncpa [#allocation22 + $0x1], 1 }
0x1150   :  { %2406 = vsyncpa [#allocation25], 1 }
0x1151   :  { %2408 = vsyncpa [#allocation25 + $0x1], 1 }
0x1152   :  { %2409 = vsyncpa [#allocation5], 1 }
0x1153   :  { %2411 = vsyncpa [#allocation5 + $0x1], 1 }

</bundles_post_ra>
